<compile_context>
chip_gen: v5e
topology: v5e:2x2
jax: 0.10.0
libtpu: 0.0.40
codegen_flags: <defaults>
</compile_context>

<pallas_src>
import jax
import jax.numpy as jnp
from jax import lax
from jax.experimental import pallas as pl
from jax.experimental.pallas import tpu as pltpu

# tag vocabulary from the module: {'B':0,'I':1,'E':2,'S':3,'<START>':4,'<STOP>':5}
TAG_B, TAG_I, TAG_E, TAG_S, START_TAG, STOP_TAG = 0, 1, 2, 3, 4, 5
K = 6                    # tagset_size
E = 32                   # embedding_dim  (module uses 300; small shapes for the test)
HIDDEN = 32              # hidden_dim     (module uses 150)
HD = HIDDEN // 2         # per-direction LSTM hidden size
VOCAB = 48               # synthetic vocabulary size (module builds it from a dataset file)
T = 8                    # sentence length
NEG = -10000.0
GW = 8 * HD              # combined gate width = slab lane width (128 here)

# Recurrence on the VPU (recommended for v6e/v7x); set False to benchmark the staged-MXU /
# plain jnp.dot path on v5e (review: compare xprof min-of-3 before committing).
RECURRENCE_ON_VPU = True

_VMEM = pl.BlockSpec(memory_space=pltpu.MemorySpace.VMEM)


# ----------------------------------------------------------------------- packed-slab layout
def _align8(n):
    return (n + 7) // 8 * 8


ROW_EF = 0                                   # embedding @ W_in_f           (VOCAB, 8*HD)
ROW_EB = ROW_EF + _align8(VOCAB)             # embedding @ W_in_b           (VOCAB, 8*HD)
ROW_WHH = ROW_EB + _align8(VOCAB)            # recurrent weights            (2*HD, 8*HD)
ROW_MISC = ROW_WHH + _align8(2 * HD)         # [b_in; h0; c0; btag; 0...]   (8, 8*HD)
ROW_WTAG_F = ROW_MISC + 8                    # hidden2tag fwd half, W.T     (HD, K)
ROW_WTAG_B = ROW_WTAG_F + _align8(HD)        # hidden2tag bwd half, W.T     (HD, K)
ROW_TRANS = ROW_WTAG_B + _align8(HD)         # CRF transitions[next, prev]  (K, K)
PARAM_ROWS = ROW_TRANS + _align8(K)          # 176 rows total (~90 KB f32)

_COST = pl.CostEstimate(
    flops=(2 * T * VOCAB * GW * 2            # one-hot gather matmuls
           + 2 * T * (2 * HD) * GW           # recurrence
           + 2 * T * HD * K * 2              # hidden2tag
           + 4 * T * K * K),                 # Viterbi DP
    transcendentals=T * (8 * HD + 2 * HD),   # gate sigmoids/tanh + tanh(c)
    bytes_accessed=PARAM_ROWS * GW * 4 + T * 2 * 4 + 4 + T * 4,
)


# ----------------------------------------------------------------------------- fused kernel
def _bilstm_crf_kernel(sent_ref, param_ref, score_ref, path_ref):
    T_ = sent_ref.shape[0]
    Hd = HD
    K_ = K

    # ---- 0. packed parameter slab: static, 8-aligned row slices (single input DMA) --------
    ef = param_ref[ROW_EF:ROW_EF + VOCAB, :]                       # (V, 8HD)
    eb = param_ref[ROW_EB:ROW_EB + VOCAB, :]                       # (V, 8HD)
    w_hh = param_ref[ROW_WHH:ROW_WHH + 2 * Hd, :]                  # (2HD, 8HD)
    misc = param_ref[ROW_MISC:ROW_MISC + 8, :]                     # (8, 8HD)
    b_in = misc[0:1, :]                                            # (1, 8HD)
    h = misc[1:2, 0:2 * Hd]                                        # (1, 2HD) = [h0_f | h0_b]
    c = misc[2:3, 0:2 * Hd]                                        # (1, 2HD) = [c0_f | c0_b]
    btag = misc[3:4, 0:K_]                                         # (1, K)
    wtag_f = param_ref[ROW_WTAG_F:ROW_WTAG_F + Hd, :][:, 0:K_]     # (HD, K)
    wtag_b = param_ref[ROW_WTAG_B:ROW_WTAG_B + Hd, :][:, 0:K_]     # (HD, K)
    trans = param_ref[ROW_TRANS:ROW_TRANS + 8, :][0:K_, 0:K_]      # (K, K) trans[next, prev]

    # ---- 1. embedding gather + LSTM input projection as one-hot matmuls --------------------
    # gates_in[s] = [fwd gate pre-acts for position s | bwd gate pre-acts for position T-1-s]
    sent2 = sent_ref[...]                                          # (T, 2) int32 [fwd | reversed]
    vocab_iota = lax.broadcasted_iota(jnp.int32, (T_, VOCAB), 1)
    oh_f = (vocab_iota == sent2[:, 0:1]).astype(jnp.float32)       # (T, V) one-hot, fwd order
    oh_r = (vocab_iota == sent2[:, 1:2]).astype(jnp.float32)       # (T, V) one-hot, reversed
    gates_in = (jnp.dot(oh_f, ef, preferred_element_type=jnp.float32)
                + jnp.dot(oh_r, eb, preferred_element_type=jnp.float32)
                + b_in)                                            # (T, 8HD)

    # ---- 2. fused bidirectional recurrence; hidden states stay in vregs --------------------
    # gate-column layout: [i_f,i_b,f_f,f_b,o_f,o_b,g_f,g_b] -> 1 sigmoid (96 lanes) + 1 tanh.
    diag_h = (lax.broadcasted_iota(jnp.int32, (2 * Hd, 2 * Hd), 0)
              == lax.broadcasted_iota(jnp.int32, (2 * Hd, 2 * Hd), 1))
    rid = lax.broadcasted_iota(jnp.int32, (T_, Hd), 0)             # row index for state capture
    hf_all = jnp.zeros((T_, Hd), jnp.float32)                      # fwd hidden, row s = pos s
    hb_all = jnp.zeros((T_, Hd), jnp.float32)                      # bwd hidden, row r = pos r
    # TODO(synk): at real module sizes (E=300, HIDDEN=150, long sentences) convert this unrolled
    # loop to lax.fori_loop and spill hf/hb/backpointers to small VMEM scratch to bound code size.
    for s in range(T_):
        if RECURRENCE_ON_VPU:
            # h @ w_hh without the MXU: diag-select h into a column (XLU lane reduce),
            # lane-broadcast-multiply against w_hh, sublane-reduce (XLU) to a (1, 8HD) row.
            h_col = jnp.sum(jnp.where(diag_h, h, 0.0), axis=1, keepdims=True)   # (2HD, 1)
            rec = jnp.sum(h_col * w_hh, axis=0, keepdims=True)                  # (1, 8HD)
        else:
            rec = jnp.dot(h, w_hh, preferred_element_type=jnp.float32)          # MXU fallback
        gates = gates_in[s:s + 1, :] + rec                         # (1, 8HD)
        sg = jax.nn.sigmoid(gates[:, 0:6 * Hd])                    # [i_f,i_b,f_f,f_b,o_f,o_b]
        gg = jnp.tanh(gates[:, 6 * Hd:8 * Hd])                     # [g_f, g_b]
        i_g = sg[:, 0:2 * Hd]
        f_g = sg[:, 2 * Hd:4 * Hd]
        o_g = sg[:, 4 * Hd:6 * Hd]
        c = f_g * c + i_g * gg
        h = o_g * jnp.tanh(c)
        hf_all = jnp.where(rid == s, h[:, 0:Hd], hf_all)                      # fwd @ position s
        hb_all = jnp.where(rid == (T_ - 1 - s), h[:, Hd:2 * Hd], hb_all)      # bwd @ pos T-1-s

    # ---- 3. hidden2tag emission scores ------------------------------------------------------
    feats = (jnp.dot(hf_all, wtag_f, preferred_element_type=jnp.float32)
             + jnp.dot(hb_all, wtag_b, preferred_element_type=jnp.float32)
             + btag)                                               # (T, K)

    # ---- 4. Viterbi DP (MXU-free; forward variable stays a (1,K) row, no transposes) -------
    iota_1k = lax.broadcasted_iota(jnp.int32, (1, K_), 1)
    iota_1k_f = iota_1k.astype(jnp.float32)
    iota_k1_f = lax.broadcasted_iota(jnp.int32, (K_, 1), 0).astype(jnp.float32)
    iota_kk_lane = lax.broadcasted_iota(jnp.int32, (K_, K_), 1).astype(jnp.float32)
    diag_k = (lax.broadcasted_iota(jnp.int32, (K_, K_), 0)
              == lax.broadcasted_iota(jnp.int32, (K_, K_), 1))
    kf = float(K_)

    fv = jnp.where(iota_1k == START_TAG, 0.0, NEG).astype(jnp.float32)        # (1, K)
    bptrs = []
    for t in range(T_):
        scores = fv + trans                                        # (K, K): scores[next, prev]
        m = jnp.max(scores, axis=1, keepdims=True)                 # (K, 1) best per next tag
        # first-argmax tie-break (min index among maxima); backpointers carried as f32 (exact).
        bp = jnp.min(jnp.where(scores == m, iota_kk_lane, kf), axis=1, keepdims=True)
        m_row = jnp.sum(jnp.where(diag_k, m, 0.0), axis=0, keepdims=True)     # (1, K) = m^T
        fv = m_row + feats[t:t + 1, :]
        bptrs.append(bp)                                           # (K, 1) column per step

    term = fv + trans[STOP_TAG:STOP_TAG + 1, :]                    # (1, K)
    tmax = jnp.max(term, axis=1, keepdims=True)                    # (1, 1) best path score
    best = jnp.min(jnp.where(term == tmax, iota_1k_f, kf), axis=1, keepdims=True)    # (1, 1)
    score_ref[...] = tmax

    # ---- 5. backtracking: accumulate the path into one (1, T) vreg, single lane-dense store -
    lane_t = lax.broadcasted_iota(jnp.int32, (1, T_), 1)
    path_vec = jnp.where(lane_t == T_ - 1, best, 0.0)              # (1, T)
    for t in range(T_ - 1, 0, -1):
        best = jnp.sum(jnp.where(iota_k1_f == best, bptrs[t], 0.0), axis=0, keepdims=True)
        path_vec = jnp.where(lane_t == t - 1, best, path_vec)
    # (backpointer at t=0 points at START_TAG, matching the PyTorch assert; not emitted)
    path_ref[...] = path_vec.astype(jnp.int32)


# ----------------------------------------------------------------------------- wrapper
def _bilstm_crf_forward_impl(sent2, param_slab):
    T_ = sent2.shape[0]
    score, path = pl.pallas_call(
        _bilstm_crf_kernel,
        out_shape=(jax.ShapeDtypeStruct((1, 1), jnp.float32),
                   jax.ShapeDtypeStruct((1, T_), jnp.int32)),
        in_specs=[_VMEM, _VMEM],
        out_specs=(_VMEM, _VMEM),
        cost_estimate=_COST,
    )(sent2, param_slab)
    return score[0, 0], path[0, :]


@jax.jit
def bilstm_crf_forward(sentence, param_slab):
    # TODO(synk): if sentences are ever batched, add a leading "parallel" grid axis so v7x's
    # second TensorCore is used; at batch=1 (the module's forward) there is nothing to shard.
    sent2 = jnp.stack([sentence, sentence[::-1]], axis=1).astype(jnp.int32)   # (T, 2)
    return _bilstm_crf_forward_impl(sent2, param_slab)


# ----------------------------------------------------------------------------- params
def _combine_bilstm_params(wih_f, whh_f, bih_f, bhh_f, wih_b, whh_b, bih_b, bhh_b):
    """Repack per-direction PyTorch LSTM weights into the fused gate-column layout.

    Combined layout (8 chunks of HD): [i_f, i_b, f_f, f_b, o_f, o_b, g_f, g_b], so sigmoid
    covers columns [0, 6*HD) and tanh covers [6*HD, 8*HD), and i/f/o slices line up with the
    packed state [h_f | h_b], [c_f | c_b].  PyTorch stacks gate rows in order (i, f, g, o).
    """
    TORCH_I, TORCH_F, TORCH_G, TORCH_O = 0, 1, 2, 3
    gate_seq = (TORCH_I, TORCH_F, TORCH_O, TORCH_G)                 # kernel order: i, f, o, g

    def rows(w, g):
        return w[g * HD:(g + 1) * HD]

    zeros_e = jnp.zeros((E, HD), jnp.float32)
    zeros_h = jnp.zeros((HD, HD), jnp.float32)

    w_in_f_cols, w_in_b_cols, w_hh_cols, b_cols = [], [], [], []
    for g in gate_seq:
        # forward-direction chunk
        w_in_f_cols.append(rows(wih_f, g).T)                                       # (E, HD)
        w_in_b_cols.append(zeros_e)
        w_hh_cols.append(jnp.concatenate([rows(whh_f, g).T, zeros_h], axis=0))     # (2HD, HD)
        b_cols.append(rows(bih_f, g) + rows(bhh_f, g))
        # backward-direction chunk
        w_in_f_cols.append(zeros_e)
        w_in_b_cols.append(rows(wih_b, g).T)
        w_hh_cols.append(jnp.concatenate([zeros_h, rows(whh_b, g).T], axis=0))
        b_cols.append(rows(bih_b, g) + rows(bhh_b, g))

    w_in_f = jnp.concatenate(w_in_f_cols, axis=1)                   # (E, 8*HD)
    w_in_b = jnp.concatenate(w_in_b_cols, axis=1)                   # (E, 8*HD)
    w_hh = jnp.concatenate(w_hh_cols, axis=1)                       # (2*HD, 8*HD)
    b_in = jnp.concatenate(b_cols)[None, :]                         # (1, 8*HD)
    return w_in_f, w_in_b, w_hh, b_in


def _pad_block(x, rows, width):
    x = jnp.asarray(x, jnp.float32)
    return jnp.pad(x, ((0, rows - x.shape[0]), (0, width - x.shape[1])))


def init_params(key):
    ks = jax.random.split(key, 14)
    bound = 1.0 / jnp.sqrt(jnp.float32(HD))
    bound_lin = 1.0 / jnp.sqrt(jnp.float32(HIDDEN))

    def u(k, shape, b):
        return jax.random.uniform(k, shape, jnp.float32, -b, b)

    embedding = jax.random.normal(ks[0], (VOCAB, E), jnp.float32)   # nn.Embedding ~ N(0,1)
    # per-direction LSTM weights (PyTorch shapes: (4*HD, E), (4*HD, HD), (4*HD,))
    wih_f = u(ks[1], (4 * HD, E), bound)
    whh_f = u(ks[2], (4 * HD, HD), bound)
    bih_f = u(ks[3], (4 * HD,), bound)
    bhh_f = u(ks[4], (4 * HD,), bound)
    wih_b = u(ks[5], (4 * HD, E), bound)
    whh_b = u(ks[6], (4 * HD, HD), bound)
    bih_b = u(ks[7], (4 * HD,), bound)
    bhh_b = u(ks[8], (4 * HD,), bound)
    # hidden2tag Linear(hidden_dim -> K)
    wtag = u(ks[9], (K, HIDDEN), bound_lin)
    btag = u(ks[10], (K,), bound_lin)
    # CRF transitions (randn, then START row / STOP column set to -10000)
    trans = jax.random.normal(ks[11], (K, K), jnp.float32)
    trans = trans.at[START_TAG, :].set(NEG)
    trans = trans.at[:, STOP_TAG].set(NEG)
    # init_hidden(): randn (2, 1, HD) -> squeeze batch; [0]=forward dir, [1]=backward dir
    h0 = jax.random.normal(ks[12], (2, HD), jnp.float32)
    c0 = jax.random.normal(ks[13], (2, HD), jnp.float32)

    w_in_f, w_in_b, w_hh, b_in = _combine_bilstm_params(
        wih_f, whh_f, bih_f, bhh_f, wih_b, whh_b, bih_b, bhh_b)

    # one-time pre-projection of the embedding table through the LSTM input weights
    ef = embedding @ w_in_f                                         # (VOCAB, 8*HD)
    eb = embedding @ w_in_b                                         # (VOCAB, 8*HD)

    h0_row = jnp.concatenate([h0[0], h0[1]])                        # (2*HD,)
    c0_row = jnp.concatenate([c0[0], c0[1]])

    misc = jnp.zeros((8, GW), jnp.float32)
    misc = misc.at[0, :].set(b_in[0])
    misc = misc.at[1, :2 * HD].set(h0_row)
    misc = misc.at[2, :2 * HD].set(c0_row)
    misc = misc.at[3, :K].set(btag)

    slab = jnp.concatenate([
        _pad_block(ef, _align8(VOCAB), GW),
        _pad_block(eb, _align8(VOCAB), GW),
        _pad_block(w_hh, _align8(2 * HD), GW),
        misc,
        _pad_block(wtag[:, 0:HD].T, _align8(HD), GW),
        _pad_block(wtag[:, HD:].T, _align8(HD), GW),
        _pad_block(trans, _align8(K), GW),
    ], axis=0)
    assert slab.shape == (PARAM_ROWS, GW), slab.shape

    return dict(
        # ---- single packed slab consumed by the kernel ----
        slab=slab,
        # ---- original PyTorch-style layouts (used by the pure-JAX reference only) ----
        embedding=embedding,
        wih_f_t=wih_f.T, whh_f_t=whh_f.T, b_f=(bih_f + bhh_f)[None, :],
        wih_b_t=wih_b.T, whh_b_t=whh_b.T, b_b=(bih_b + bhh_b)[None, :],
        h0=h0, c0=c0, wtag_t=wtag.T, btag_row=btag[None, :], trans=trans,
    )


# ----------------------------------------------------------------------------- pure-JAX reference
def ref_forward(sentence, params):
    embeds = params['embedding'][sentence]

    def run_dir(wih_t, whh_t, b, h, c, order):
        hs = [None] * T
        for t in order:
            x = embeds[t:t + 1]
            g = x @ wih_t + h @ whh_t + b
            i_g = jax.nn.sigmoid(g[:, :HD]); f_g = jax.nn.sigmoid(g[:, HD:2 * HD])
            g_g = jnp.tanh(g[:, 2 * HD:3 * HD]); o_g = jax.nn.sigmoid(g[:, 3 * HD:])
            c = f_g * c + i_g * g_g
            h = o_g * jnp.tanh(c)
            hs[t] = h
        return jnp.concatenate(hs, axis=0)

    hf = run_dir(params['wih_f_t'], params['whh_f_t'], params['b_f'],
                 params['h0'][0:1], params['c0'][0:1], range(T))
    hb = run_dir(params['wih_b_t'], params['whh_b_t'], params['b_b'],
                 params['h0'][1:2], params['c0'][1:2], range(T - 1, -1, -1))
    feats = jnp.concatenate([hf, hb], axis=1) @ params['wtag_t'] + params['btag_row']

    trans = params['trans']
    fv = jnp.full((K,), NEG, jnp.float32).at[START_TAG].set(0.0)
    bptrs = []
    for t in range(T):
        scores = fv[None, :] + trans            # [next, prev]
        bptrs.append(jnp.argmax(scores, axis=1))
        fv = jnp.max(scores, axis=1) + feats[t]
    term = fv + trans[STOP_TAG]
    best = jnp.argmax(term)
    score = term[best]
    path = [best]
    for t in range(T - 1, 0, -1):
        best = bptrs[t][best]
        path.append(best)
    path.reverse()
    return score, jnp.stack(path).astype(jnp.int32)


# ----------------------------------------------------------------------------- main
if __name__ == "__main__":
    key = jax.random.PRNGKey(0)
    pkey, skey = jax.random.split(key)
    params = init_params(pkey)
    sentence = jax.random.randint(skey, (T,), 0, VOCAB, dtype=jnp.int32)

    score, tag_seq = bilstm_crf_forward(sentence, params['slab'])
    score = jax.block_until_ready(score)
    tag_seq = jax.block_until_ready(tag_seq)

    ref_score, ref_tags = ref_forward(sentence, params)
    assert jnp.allclose(score, ref_score, atol=1e-2, rtol=1e-3), (score, ref_score)
    assert jnp.array_equal(tag_seq, ref_tags), (tag_seq, ref_tags)

    print("KERNEL_OK")
</pallas_src>

<mosaic_0001>
module attributes {stable_mosaic.version = 11 : i64} {
  func.func @_bilstm_crf_kernel(%arg0: memref<8x2xi32, #tpu.memory_space<vmem>>, %arg1: memref<176x128xf32, #tpu.memory_space<vmem>>, %arg2: memref<1x1xf32, #tpu.memory_space<vmem>>, %arg3: memref<1x8xi32, #tpu.memory_space<vmem>>) attributes {dimension_semantics = [], scalar_prefetch = 0 : i64, scratch_operands = 0 : i64, tpu.core_type = #tpu.core_type<tc>} {
    %c0 = arith.constant 0 : index
    %c0_0 = arith.constant 0 : index
    %0 = vector.load %arg1[%c0, %c0_0] : memref<176x128xf32, #tpu.memory_space<vmem>>, vector<48x128xf32>
    %c48 = arith.constant 48 : index
    %c0_1 = arith.constant 0 : index
    %1 = vector.load %arg1[%c48, %c0_1] : memref<176x128xf32, #tpu.memory_space<vmem>>, vector<48x128xf32>
    %c96 = arith.constant 96 : index
    %c0_2 = arith.constant 0 : index
    %2 = vector.load %arg1[%c96, %c0_2] : memref<176x128xf32, #tpu.memory_space<vmem>>, vector<32x128xf32>
    %c128 = arith.constant 128 : index
    %c0_3 = arith.constant 0 : index
    %3 = vector.load %arg1[%c128, %c0_3] : memref<176x128xf32, #tpu.memory_space<vmem>>, vector<8x128xf32>
    %4 = vector.extract_strided_slice %3 {offsets = [0, 0], sizes = [1, 128], strides = [1, 1]} : vector<8x128xf32> to vector<1x128xf32>
    %5 = vector.extract_strided_slice %3 {offsets = [1, 0], sizes = [1, 32], strides = [1, 1]} : vector<8x128xf32> to vector<1x32xf32>
    %6 = vector.extract_strided_slice %3 {offsets = [2, 0], sizes = [1, 32], strides = [1, 1]} : vector<8x128xf32> to vector<1x32xf32>
    %7 = vector.extract_strided_slice %3 {offsets = [3, 0], sizes = [1, 6], strides = [1, 1]} : vector<8x128xf32> to vector<1x6xf32>
    %c136 = arith.constant 136 : index
    %c0_4 = arith.constant 0 : index
    %8 = vector.load %arg1[%c136, %c0_4] : memref<176x128xf32, #tpu.memory_space<vmem>>, vector<16x128xf32>
    %9 = vector.extract_strided_slice %8 {offsets = [0, 0], sizes = [16, 6], strides = [1, 1]} : vector<16x128xf32> to vector<16x6xf32>
    %c152 = arith.constant 152 : index
    %c0_5 = arith.constant 0 : index
    %10 = vector.load %arg1[%c152, %c0_5] : memref<176x128xf32, #tpu.memory_space<vmem>>, vector<16x128xf32>
    %11 = vector.extract_strided_slice %10 {offsets = [0, 0], sizes = [16, 6], strides = [1, 1]} : vector<16x128xf32> to vector<16x6xf32>
    %c168 = arith.constant 168 : index
    %c0_6 = arith.constant 0 : index
    %12 = vector.load %arg1[%c168, %c0_6] : memref<176x128xf32, #tpu.memory_space<vmem>>, vector<8x128xf32>
    %13 = vector.extract_strided_slice %12 {offsets = [0, 0], sizes = [6, 6], strides = [1, 1]} : vector<8x128xf32> to vector<6x6xf32>
    %c0_7 = arith.constant 0 : index
    %c0_8 = arith.constant 0 : index
    %14 = vector.load %arg0[%c0_7, %c0_8] : memref<8x2xi32, #tpu.memory_space<vmem>>, vector<8x2xi32>
    %15 = tpu.iota {dimensions = array<i32: 1>} : vector<8x48xi32>
    %16 = vector.extract_strided_slice %14 {offsets = [0, 0], sizes = [8, 1], strides = [1, 1]} : vector<8x2xi32> to vector<8x1xi32>
    %17 = vector.broadcast %16 : vector<8x1xi32> to vector<8x48xi32>
    %18 = arith.cmpi eq, %15, %17 : vector<8x48xi32>
    %19 = arith.extui %18 : vector<8x48xi1> to vector<8x48xi32>
    %20 = arith.sitofp %19 : vector<8x48xi32> to vector<8x48xf32>
    %21 = vector.extract_strided_slice %14 {offsets = [0, 1], sizes = [8, 1], strides = [1, 1]} : vector<8x2xi32> to vector<8x1xi32>
    %22 = vector.broadcast %21 : vector<8x1xi32> to vector<8x48xi32>
    %23 = arith.cmpi eq, %15, %22 : vector<8x48xi32>
    %24 = arith.extui %23 : vector<8x48xi1> to vector<8x48xi32>
    %25 = arith.sitofp %24 : vector<8x48xi32> to vector<8x48xf32>
    %cst = arith.constant dense<0.000000e+00> : vector<8x128xf32>
    %26 = tpu.matmul %20, %0, %cst {dimension_numbers = #tpu.dot_dimension_numbers<[1], [0], [0], [1], [0, 0, 1, 1], [], []>} : vector<8x48xf32>, vector<48x128xf32>, vector<8x128xf32> -> vector<8x128xf32>
    %cst_9 = arith.constant dense<0.000000e+00> : vector<8x128xf32>
    %27 = tpu.matmul %25, %1, %cst_9 {dimension_numbers = #tpu.dot_dimension_numbers<[1], [0], [0], [1], [0, 0, 1, 1], [], []>} : vector<8x48xf32>, vector<48x128xf32>, vector<8x128xf32> -> vector<8x128xf32>
    %28 = arith.addf %26, %27 : vector<8x128xf32>
    %29 = vector.broadcast %4 : vector<1x128xf32> to vector<8x128xf32>
    %30 = arith.addf %28, %29 : vector<8x128xf32>
    %31 = tpu.iota {dimensions = array<i32: 0>} : vector<32x32xi32>
    %32 = tpu.iota {dimensions = array<i32: 1>} : vector<32x32xi32>
    %33 = arith.cmpi eq, %31, %32 : vector<32x32xi32>
    %34 = tpu.iota {dimensions = array<i32: 0>} : vector<8x16xi32>
    %cst_10 = arith.constant 0.000000e+00 : f32
    %35 = vector.broadcast %cst_10 : f32 to vector<8x16xf32>
    %cst_11 = arith.constant 0.000000e+00 : f32
    %36 = vector.broadcast %cst_11 : f32 to vector<8x16xf32>
    %cst_12 = arith.constant 0.000000e+00 : f32
    %37 = vector.shape_cast %5 : vector<1x32xf32> to vector<1x32xf32>
    %38 = vector.broadcast %37 : vector<1x32xf32> to vector<32x32xf32>
    %39 = vector.broadcast %cst_12 : f32 to vector<32x32xf32>
    %40 = arith.select %33, %38, %39 : vector<32x32xi1>, vector<32x32xf32>
    %cst_13 = arith.constant dense<0.000000e+00> : vector<32xf32>
    %41 = vector.multi_reduction <add>, %40, %cst_13 [1] : vector<32x32xf32> to vector<32xf32>
    %42 = vector.shape_cast %41 : vector<32xf32> to vector<32x1xf32>
    %43 = vector.broadcast %42 : vector<32x1xf32> to vector<32x128xf32>
    %44 = arith.mulf %43, %2 : vector<32x128xf32>
    %cst_14 = arith.constant dense<0.000000e+00> : vector<128xf32>
    %45 = vector.multi_reduction <add>, %44, %cst_14 [0] : vector<32x128xf32> to vector<128xf32>
    %46 = vector.shape_cast %45 : vector<128xf32> to vector<1x128xf32>
    %47 = vector.extract_strided_slice %30 {offsets = [0, 0], sizes = [1, 128], strides = [1, 1]} : vector<8x128xf32> to vector<1x128xf32>
    %48 = arith.addf %47, %46 : vector<1x128xf32>
    %49 = vector.extract_strided_slice %48 {offsets = [0, 0], sizes = [1, 96], strides = [1, 1]} : vector<1x128xf32> to vector<1x96xf32>
    %50 = arith.negf %49 : vector<1x96xf32>
    %51 = math.exp %50 : vector<1x96xf32>
    %cst_15 = arith.constant 1.000000e+00 : f32
    %52 = vector.broadcast %cst_15 : f32 to vector<1x96xf32>
    %53 = arith.addf %52, %51 : vector<1x96xf32>
    %54 = arith.divf %52, %53 : vector<1x96xf32>
    %55 = vector.extract_strided_slice %48 {offsets = [0, 96], sizes = [1, 32], strides = [1, 1]} : vector<1x128xf32> to vector<1x32xf32>
    %56 = math.tanh %55 : vector<1x32xf32>
    %57 = vector.extract_strided_slice %54 {offsets = [0, 0], sizes = [1, 32], strides = [1, 1]} : vector<1x96xf32> to vector<1x32xf32>
    %58 = vector.extract_strided_slice %54 {offsets = [0, 32], sizes = [1, 32], strides = [1, 1]} : vector<1x96xf32> to vector<1x32xf32>
    %59 = vector.extract_strided_slice %54 {offsets = [0, 64], sizes = [1, 32], strides = [1, 1]} : vector<1x96xf32> to vector<1x32xf32>
    %60 = arith.mulf %58, %6 : vector<1x32xf32>
    %61 = arith.mulf %57, %56 : vector<1x32xf32>
    %62 = arith.addf %60, %61 : vector<1x32xf32>
    %63 = math.tanh %62 : vector<1x32xf32>
    %64 = arith.mulf %59, %63 : vector<1x32xf32>
    %c0_i32 = arith.constant 0 : i32
    %65 = vector.broadcast %c0_i32 : i32 to vector<8x16xi32>
    %66 = arith.cmpi eq, %34, %65 : vector<8x16xi32>
    %67 = vector.extract_strided_slice %64 {offsets = [0, 0], sizes = [1, 16], strides = [1, 1]} : vector<1x32xf32> to vector<1x16xf32>
    %68 = vector.shape_cast %67 : vector<1x16xf32> to vector<1x16xf32>
    %69 = vector.broadcast %68 : vector<1x16xf32> to vector<8x16xf32>
    %70 = arith.select %66, %69, %35 : vector<8x16xi1>, vector<8x16xf32>
    %c7_i32 = arith.constant 7 : i32
    %71 = vector.broadcast %c7_i32 : i32 to vector<8x16xi32>
    %72 = arith.cmpi eq, %34, %71 : vector<8x16xi32>
    %73 = vector.extract_strided_slice %64 {offsets = [0, 16], sizes = [1, 16], strides = [1, 1]} : vector<1x32xf32> to vector<1x16xf32>
    %74 = vector.shape_cast %73 : vector<1x16xf32> to vector<1x16xf32>
    %75 = vector.broadcast %74 : vector<1x16xf32> to vector<8x16xf32>
    %76 = arith.select %72, %75, %36 : vector<8x16xi1>, vector<8x16xf32>
    %cst_16 = arith.constant 0.000000e+00 : f32
    %77 = vector.shape_cast %64 : vector<1x32xf32> to vector<1x32xf32>
    %78 = vector.broadcast %77 : vector<1x32xf32> to vector<32x32xf32>
    %79 = vector.broadcast %cst_16 : f32 to vector<32x32xf32>
    %80 = arith.select %33, %78, %79 : vector<32x32xi1>, vector<32x32xf32>
    %cst_17 = arith.constant dense<0.000000e+00> : vector<32xf32>
    %81 = vector.multi_reduction <add>, %80, %cst_17 [1] : vector<32x32xf32> to vector<32xf32>
    %82 = vector.shape_cast %81 : vector<32xf32> to vector<32x1xf32>
    %83 = vector.broadcast %82 : vector<32x1xf32> to vector<32x128xf32>
    %84 = arith.mulf %83, %2 : vector<32x128xf32>
    %cst_18 = arith.constant dense<0.000000e+00> : vector<128xf32>
    %85 = vector.multi_reduction <add>, %84, %cst_18 [0] : vector<32x128xf32> to vector<128xf32>
    %86 = vector.shape_cast %85 : vector<128xf32> to vector<1x128xf32>
    %87 = vector.extract_strided_slice %30 {offsets = [1, 0], sizes = [1, 128], strides = [1, 1]} : vector<8x128xf32> to vector<1x128xf32>
    %88 = arith.addf %87, %86 : vector<1x128xf32>
    %89 = vector.extract_strided_slice %88 {offsets = [0, 0], sizes = [1, 96], strides = [1, 1]} : vector<1x128xf32> to vector<1x96xf32>
    %90 = arith.negf %89 : vector<1x96xf32>
    %91 = math.exp %90 : vector<1x96xf32>
    %cst_19 = arith.constant 1.000000e+00 : f32
    %92 = vector.broadcast %cst_19 : f32 to vector<1x96xf32>
    %93 = arith.addf %92, %91 : vector<1x96xf32>
    %94 = arith.divf %92, %93 : vector<1x96xf32>
    %95 = vector.extract_strided_slice %88 {offsets = [0, 96], sizes = [1, 32], strides = [1, 1]} : vector<1x128xf32> to vector<1x32xf32>
    %96 = math.tanh %95 : vector<1x32xf32>
    %97 = vector.extract_strided_slice %94 {offsets = [0, 0], sizes = [1, 32], strides = [1, 1]} : vector<1x96xf32> to vector<1x32xf32>
    %98 = vector.extract_strided_slice %94 {offsets = [0, 32], sizes = [1, 32], strides = [1, 1]} : vector<1x96xf32> to vector<1x32xf32>
    %99 = vector.extract_strided_slice %94 {offsets = [0, 64], sizes = [1, 32], strides = [1, 1]} : vector<1x96xf32> to vector<1x32xf32>
    %100 = arith.mulf %98, %62 : vector<1x32xf32>
    %101 = arith.mulf %97, %96 : vector<1x32xf32>
    %102 = arith.addf %100, %101 : vector<1x32xf32>
    %103 = math.tanh %102 : vector<1x32xf32>
    %104 = arith.mulf %99, %103 : vector<1x32xf32>
    %c1_i32 = arith.constant 1 : i32
    %105 = vector.broadcast %c1_i32 : i32 to vector<8x16xi32>
    %106 = arith.cmpi eq, %34, %105 : vector<8x16xi32>
    %107 = vector.extract_strided_slice %104 {offsets = [0, 0], sizes = [1, 16], strides = [1, 1]} : vector<1x32xf32> to vector<1x16xf32>
    %108 = vector.shape_cast %107 : vector<1x16xf32> to vector<1x16xf32>
    %109 = vector.broadcast %108 : vector<1x16xf32> to vector<8x16xf32>
    %110 = arith.select %106, %109, %70 : vector<8x16xi1>, vector<8x16xf32>
    %c6_i32 = arith.constant 6 : i32
    %111 = vector.broadcast %c6_i32 : i32 to vector<8x16xi32>
    %112 = arith.cmpi eq, %34, %111 : vector<8x16xi32>
    %113 = vector.extract_strided_slice %104 {offsets = [0, 16], sizes = [1, 16], strides = [1, 1]} : vector<1x32xf32> to vector<1x16xf32>
    %114 = vector.shape_cast %113 : vector<1x16xf32> to vector<1x16xf32>
    %115 = vector.broadcast %114 : vector<1x16xf32> to vector<8x16xf32>
    %116 = arith.select %112, %115, %76 : vector<8x16xi1>, vector<8x16xf32>
    %cst_20 = arith.constant 0.000000e+00 : f32
    %117 = vector.shape_cast %104 : vector<1x32xf32> to vector<1x32xf32>
    %118 = vector.broadcast %117 : vector<1x32xf32> to vector<32x32xf32>
    %119 = vector.broadcast %cst_20 : f32 to vector<32x32xf32>
    %120 = arith.select %33, %118, %119 : vector<32x32xi1>, vector<32x32xf32>
    %cst_21 = arith.constant dense<0.000000e+00> : vector<32xf32>
    %121 = vector.multi_reduction <add>, %120, %cst_21 [1] : vector<32x32xf32> to vector<32xf32>
    %122 = vector.shape_cast %121 : vector<32xf32> to vector<32x1xf32>
    %123 = vector.broadcast %122 : vector<32x1xf32> to vector<32x128xf32>
    %124 = arith.mulf %123, %2 : vector<32x128xf32>
    %cst_22 = arith.constant dense<0.000000e+00> : vector<128xf32>
    %125 = vector.multi_reduction <add>, %124, %cst_22 [0] : vector<32x128xf32> to vector<128xf32>
    %126 = vector.shape_cast %125 : vector<128xf32> to vector<1x128xf32>
    %127 = vector.extract_strided_slice %30 {offsets = [2, 0], sizes = [1, 128], strides = [1, 1]} : vector<8x128xf32> to vector<1x128xf32>
    %128 = arith.addf %127, %126 : vector<1x128xf32>
    %129 = vector.extract_strided_slice %128 {offsets = [0, 0], sizes = [1, 96], strides = [1, 1]} : vector<1x128xf32> to vector<1x96xf32>
    %130 = arith.negf %129 : vector<1x96xf32>
    %131 = math.exp %130 : vector<1x96xf32>
    %cst_23 = arith.constant 1.000000e+00 : f32
    %132 = vector.broadcast %cst_23 : f32 to vector<1x96xf32>
    %133 = arith.addf %132, %131 : vector<1x96xf32>
    %134 = arith.divf %132, %133 : vector<1x96xf32>
    %135 = vector.extract_strided_slice %128 {offsets = [0, 96], sizes = [1, 32], strides = [1, 1]} : vector<1x128xf32> to vector<1x32xf32>
    %136 = math.tanh %135 : vector<1x32xf32>
    %137 = vector.extract_strided_slice %134 {offsets = [0, 0], sizes = [1, 32], strides = [1, 1]} : vector<1x96xf32> to vector<1x32xf32>
    %138 = vector.extract_strided_slice %134 {offsets = [0, 32], sizes = [1, 32], strides = [1, 1]} : vector<1x96xf32> to vector<1x32xf32>
    %139 = vector.extract_strided_slice %134 {offsets = [0, 64], sizes = [1, 32], strides = [1, 1]} : vector<1x96xf32> to vector<1x32xf32>
    %140 = arith.mulf %138, %102 : vector<1x32xf32>
    %141 = arith.mulf %137, %136 : vector<1x32xf32>
    %142 = arith.addf %140, %141 : vector<1x32xf32>
    %143 = math.tanh %142 : vector<1x32xf32>
    %144 = arith.mulf %139, %143 : vector<1x32xf32>
    %c2_i32 = arith.constant 2 : i32
    %145 = vector.broadcast %c2_i32 : i32 to vector<8x16xi32>
    %146 = arith.cmpi eq, %34, %145 : vector<8x16xi32>
    %147 = vector.extract_strided_slice %144 {offsets = [0, 0], sizes = [1, 16], strides = [1, 1]} : vector<1x32xf32> to vector<1x16xf32>
    %148 = vector.shape_cast %147 : vector<1x16xf32> to vector<1x16xf32>
    %149 = vector.broadcast %148 : vector<1x16xf32> to vector<8x16xf32>
    %150 = arith.select %146, %149, %110 : vector<8x16xi1>, vector<8x16xf32>
    %c5_i32 = arith.constant 5 : i32
    %151 = vector.broadcast %c5_i32 : i32 to vector<8x16xi32>
    %152 = arith.cmpi eq, %34, %151 : vector<8x16xi32>
    %153 = vector.extract_strided_slice %144 {offsets = [0, 16], sizes = [1, 16], strides = [1, 1]} : vector<1x32xf32> to vector<1x16xf32>
    %154 = vector.shape_cast %153 : vector<1x16xf32> to vector<1x16xf32>
    %155 = vector.broadcast %154 : vector<1x16xf32> to vector<8x16xf32>
    %156 = arith.select %152, %155, %116 : vector<8x16xi1>, vector<8x16xf32>
    %cst_24 = arith.constant 0.000000e+00 : f32
    %157 = vector.shape_cast %144 : vector<1x32xf32> to vector<1x32xf32>
    %158 = vector.broadcast %157 : vector<1x32xf32> to vector<32x32xf32>
    %159 = vector.broadcast %cst_24 : f32 to vector<32x32xf32>
    %160 = arith.select %33, %158, %159 : vector<32x32xi1>, vector<32x32xf32>
    %cst_25 = arith.constant dense<0.000000e+00> : vector<32xf32>
    %161 = vector.multi_reduction <add>, %160, %cst_25 [1] : vector<32x32xf32> to vector<32xf32>
    %162 = vector.shape_cast %161 : vector<32xf32> to vector<32x1xf32>
    %163 = vector.broadcast %162 : vector<32x1xf32> to vector<32x128xf32>
    %164 = arith.mulf %163, %2 : vector<32x128xf32>
    %cst_26 = arith.constant dense<0.000000e+00> : vector<128xf32>
    %165 = vector.multi_reduction <add>, %164, %cst_26 [0] : vector<32x128xf32> to vector<128xf32>
    %166 = vector.shape_cast %165 : vector<128xf32> to vector<1x128xf32>
    %167 = vector.extract_strided_slice %30 {offsets = [3, 0], sizes = [1, 128], strides = [1, 1]} : vector<8x128xf32> to vector<1x128xf32>
    %168 = arith.addf %167, %166 : vector<1x128xf32>
    %169 = vector.extract_strided_slice %168 {offsets = [0, 0], sizes = [1, 96], strides = [1, 1]} : vector<1x128xf32> to vector<1x96xf32>
    %170 = arith.negf %169 : vector<1x96xf32>
    %171 = math.exp %170 : vector<1x96xf32>
    %cst_27 = arith.constant 1.000000e+00 : f32
    %172 = vector.broadcast %cst_27 : f32 to vector<1x96xf32>
    %173 = arith.addf %172, %171 : vector<1x96xf32>
    %174 = arith.divf %172, %173 : vector<1x96xf32>
    %175 = vector.extract_strided_slice %168 {offsets = [0, 96], sizes = [1, 32], strides = [1, 1]} : vector<1x128xf32> to vector<1x32xf32>
    %176 = math.tanh %175 : vector<1x32xf32>
    %177 = vector.extract_strided_slice %174 {offsets = [0, 0], sizes = [1, 32], strides = [1, 1]} : vector<1x96xf32> to vector<1x32xf32>
    %178 = vector.extract_strided_slice %174 {offsets = [0, 32], sizes = [1, 32], strides = [1, 1]} : vector<1x96xf32> to vector<1x32xf32>
    %179 = vector.extract_strided_slice %174 {offsets = [0, 64], sizes = [1, 32], strides = [1, 1]} : vector<1x96xf32> to vector<1x32xf32>
    %180 = arith.mulf %178, %142 : vector<1x32xf32>
    %181 = arith.mulf %177, %176 : vector<1x32xf32>
    %182 = arith.addf %180, %181 : vector<1x32xf32>
    %183 = math.tanh %182 : vector<1x32xf32>
    %184 = arith.mulf %179, %183 : vector<1x32xf32>
    %c3_i32 = arith.constant 3 : i32
    %185 = vector.broadcast %c3_i32 : i32 to vector<8x16xi32>
    %186 = arith.cmpi eq, %34, %185 : vector<8x16xi32>
    %187 = vector.extract_strided_slice %184 {offsets = [0, 0], sizes = [1, 16], strides = [1, 1]} : vector<1x32xf32> to vector<1x16xf32>
    %188 = vector.shape_cast %187 : vector<1x16xf32> to vector<1x16xf32>
    %189 = vector.broadcast %188 : vector<1x16xf32> to vector<8x16xf32>
    %190 = arith.select %186, %189, %150 : vector<8x16xi1>, vector<8x16xf32>
    %c4_i32 = arith.constant 4 : i32
    %191 = vector.broadcast %c4_i32 : i32 to vector<8x16xi32>
    %192 = arith.cmpi eq, %34, %191 : vector<8x16xi32>
    %193 = vector.extract_strided_slice %184 {offsets = [0, 16], sizes = [1, 16], strides = [1, 1]} : vector<1x32xf32> to vector<1x16xf32>
    %194 = vector.shape_cast %193 : vector<1x16xf32> to vector<1x16xf32>
    %195 = vector.broadcast %194 : vector<1x16xf32> to vector<8x16xf32>
    %196 = arith.select %192, %195, %156 : vector<8x16xi1>, vector<8x16xf32>
    %cst_28 = arith.constant 0.000000e+00 : f32
    %197 = vector.shape_cast %184 : vector<1x32xf32> to vector<1x32xf32>
    %198 = vector.broadcast %197 : vector<1x32xf32> to vector<32x32xf32>
    %199 = vector.broadcast %cst_28 : f32 to vector<32x32xf32>
    %200 = arith.select %33, %198, %199 : vector<32x32xi1>, vector<32x32xf32>
    %cst_29 = arith.constant dense<0.000000e+00> : vector<32xf32>
    %201 = vector.multi_reduction <add>, %200, %cst_29 [1] : vector<32x32xf32> to vector<32xf32>
    %202 = vector.shape_cast %201 : vector<32xf32> to vector<32x1xf32>
    %203 = vector.broadcast %202 : vector<32x1xf32> to vector<32x128xf32>
    %204 = arith.mulf %203, %2 : vector<32x128xf32>
    %cst_30 = arith.constant dense<0.000000e+00> : vector<128xf32>
    %205 = vector.multi_reduction <add>, %204, %cst_30 [0] : vector<32x128xf32> to vector<128xf32>
    %206 = vector.shape_cast %205 : vector<128xf32> to vector<1x128xf32>
    %207 = vector.extract_strided_slice %30 {offsets = [4, 0], sizes = [1, 128], strides = [1, 1]} : vector<8x128xf32> to vector<1x128xf32>
    %208 = arith.addf %207, %206 : vector<1x128xf32>
    %209 = vector.extract_strided_slice %208 {offsets = [0, 0], sizes = [1, 96], strides = [1, 1]} : vector<1x128xf32> to vector<1x96xf32>
    %210 = arith.negf %209 : vector<1x96xf32>
    %211 = math.exp %210 : vector<1x96xf32>
    %cst_31 = arith.constant 1.000000e+00 : f32
    %212 = vector.broadcast %cst_31 : f32 to vector<1x96xf32>
    %213 = arith.addf %212, %211 : vector<1x96xf32>
    %214 = arith.divf %212, %213 : vector<1x96xf32>
    %215 = vector.extract_strided_slice %208 {offsets = [0, 96], sizes = [1, 32], strides = [1, 1]} : vector<1x128xf32> to vector<1x32xf32>
    %216 = math.tanh %215 : vector<1x32xf32>
    %217 = vector.extract_strided_slice %214 {offsets = [0, 0], sizes = [1, 32], strides = [1, 1]} : vector<1x96xf32> to vector<1x32xf32>
    %218 = vector.extract_strided_slice %214 {offsets = [0, 32], sizes = [1, 32], strides = [1, 1]} : vector<1x96xf32> to vector<1x32xf32>
    %219 = vector.extract_strided_slice %214 {offsets = [0, 64], sizes = [1, 32], strides = [1, 1]} : vector<1x96xf32> to vector<1x32xf32>
    %220 = arith.mulf %218, %182 : vector<1x32xf32>
    %221 = arith.mulf %217, %216 : vector<1x32xf32>
    %222 = arith.addf %220, %221 : vector<1x32xf32>
    %223 = math.tanh %222 : vector<1x32xf32>
    %224 = arith.mulf %219, %223 : vector<1x32xf32>
    %c4_i32_32 = arith.constant 4 : i32
    %225 = vector.broadcast %c4_i32_32 : i32 to vector<8x16xi32>
    %226 = arith.cmpi eq, %34, %225 : vector<8x16xi32>
    %227 = vector.extract_strided_slice %224 {offsets = [0, 0], sizes = [1, 16], strides = [1, 1]} : vector<1x32xf32> to vector<1x16xf32>
    %228 = vector.shape_cast %227 : vector<1x16xf32> to vector<1x16xf32>
    %229 = vector.broadcast %228 : vector<1x16xf32> to vector<8x16xf32>
    %230 = arith.select %226, %229, %190 : vector<8x16xi1>, vector<8x16xf32>
    %c3_i32_33 = arith.constant 3 : i32
    %231 = vector.broadcast %c3_i32_33 : i32 to vector<8x16xi32>
    %232 = arith.cmpi eq, %34, %231 : vector<8x16xi32>
    %233 = vector.extract_strided_slice %224 {offsets = [0, 16], sizes = [1, 16], strides = [1, 1]} : vector<1x32xf32> to vector<1x16xf32>
    %234 = vector.shape_cast %233 : vector<1x16xf32> to vector<1x16xf32>
    %235 = vector.broadcast %234 : vector<1x16xf32> to vector<8x16xf32>
    %236 = arith.select %232, %235, %196 : vector<8x16xi1>, vector<8x16xf32>
    %cst_34 = arith.constant 0.000000e+00 : f32
    %237 = vector.shape_cast %224 : vector<1x32xf32> to vector<1x32xf32>
    %238 = vector.broadcast %237 : vector<1x32xf32> to vector<32x32xf32>
    %239 = vector.broadcast %cst_34 : f32 to vector<32x32xf32>
    %240 = arith.select %33, %238, %239 : vector<32x32xi1>, vector<32x32xf32>
    %cst_35 = arith.constant dense<0.000000e+00> : vector<32xf32>
    %241 = vector.multi_reduction <add>, %240, %cst_35 [1] : vector<32x32xf32> to vector<32xf32>
    %242 = vector.shape_cast %241 : vector<32xf32> to vector<32x1xf32>
    %243 = vector.broadcast %242 : vector<32x1xf32> to vector<32x128xf32>
    %244 = arith.mulf %243, %2 : vector<32x128xf32>
    %cst_36 = arith.constant dense<0.000000e+00> : vector<128xf32>
    %245 = vector.multi_reduction <add>, %244, %cst_36 [0] : vector<32x128xf32> to vector<128xf32>
    %246 = vector.shape_cast %245 : vector<128xf32> to vector<1x128xf32>
    %247 = vector.extract_strided_slice %30 {offsets = [5, 0], sizes = [1, 128], strides = [1, 1]} : vector<8x128xf32> to vector<1x128xf32>
    %248 = arith.addf %247, %246 : vector<1x128xf32>
    %249 = vector.extract_strided_slice %248 {offsets = [0, 0], sizes = [1, 96], strides = [1, 1]} : vector<1x128xf32> to vector<1x96xf32>
    %250 = arith.negf %249 : vector<1x96xf32>
    %251 = math.exp %250 : vector<1x96xf32>
    %cst_37 = arith.constant 1.000000e+00 : f32
    %252 = vector.broadcast %cst_37 : f32 to vector<1x96xf32>
    %253 = arith.addf %252, %251 : vector<1x96xf32>
    %254 = arith.divf %252, %253 : vector<1x96xf32>
    %255 = vector.extract_strided_slice %248 {offsets = [0, 96], sizes = [1, 32], strides = [1, 1]} : vector<1x128xf32> to vector<1x32xf32>
    %256 = math.tanh %255 : vector<1x32xf32>
    %257 = vector.extract_strided_slice %254 {offsets = [0, 0], sizes = [1, 32], strides = [1, 1]} : vector<1x96xf32> to vector<1x32xf32>
    %258 = vector.extract_strided_slice %254 {offsets = [0, 32], sizes = [1, 32], strides = [1, 1]} : vector<1x96xf32> to vector<1x32xf32>
    %259 = vector.extract_strided_slice %254 {offsets = [0, 64], sizes = [1, 32], strides = [1, 1]} : vector<1x96xf32> to vector<1x32xf32>
    %260 = arith.mulf %258, %222 : vector<1x32xf32>
    %261 = arith.mulf %257, %256 : vector<1x32xf32>
    %262 = arith.addf %260, %261 : vector<1x32xf32>
    %263 = math.tanh %262 : vector<1x32xf32>
    %264 = arith.mulf %259, %263 : vector<1x32xf32>
    %c5_i32_38 = arith.constant 5 : i32
    %265 = vector.broadcast %c5_i32_38 : i32 to vector<8x16xi32>
    %266 = arith.cmpi eq, %34, %265 : vector<8x16xi32>
    %267 = vector.extract_strided_slice %264 {offsets = [0, 0], sizes = [1, 16], strides = [1, 1]} : vector<1x32xf32> to vector<1x16xf32>
    %268 = vector.shape_cast %267 : vector<1x16xf32> to vector<1x16xf32>
    %269 = vector.broadcast %268 : vector<1x16xf32> to vector<8x16xf32>
    %270 = arith.select %266, %269, %230 : vector<8x16xi1>, vector<8x16xf32>
    %c2_i32_39 = arith.constant 2 : i32
    %271 = vector.broadcast %c2_i32_39 : i32 to vector<8x16xi32>
    %272 = arith.cmpi eq, %34, %271 : vector<8x16xi32>
    %273 = vector.extract_strided_slice %264 {offsets = [0, 16], sizes = [1, 16], strides = [1, 1]} : vector<1x32xf32> to vector<1x16xf32>
    %274 = vector.shape_cast %273 : vector<1x16xf32> to vector<1x16xf32>
    %275 = vector.broadcast %274 : vector<1x16xf32> to vector<8x16xf32>
    %276 = arith.select %272, %275, %236 : vector<8x16xi1>, vector<8x16xf32>
    %cst_40 = arith.constant 0.000000e+00 : f32
    %277 = vector.shape_cast %264 : vector<1x32xf32> to vector<1x32xf32>
    %278 = vector.broadcast %277 : vector<1x32xf32> to vector<32x32xf32>
    %279 = vector.broadcast %cst_40 : f32 to vector<32x32xf32>
    %280 = arith.select %33, %278, %279 : vector<32x32xi1>, vector<32x32xf32>
    %cst_41 = arith.constant dense<0.000000e+00> : vector<32xf32>
    %281 = vector.multi_reduction <add>, %280, %cst_41 [1] : vector<32x32xf32> to vector<32xf32>
    %282 = vector.shape_cast %281 : vector<32xf32> to vector<32x1xf32>
    %283 = vector.broadcast %282 : vector<32x1xf32> to vector<32x128xf32>
    %284 = arith.mulf %283, %2 : vector<32x128xf32>
    %cst_42 = arith.constant dense<0.000000e+00> : vector<128xf32>
    %285 = vector.multi_reduction <add>, %284, %cst_42 [0] : vector<32x128xf32> to vector<128xf32>
    %286 = vector.shape_cast %285 : vector<128xf32> to vector<1x128xf32>
    %287 = vector.extract_strided_slice %30 {offsets = [6, 0], sizes = [1, 128], strides = [1, 1]} : vector<8x128xf32> to vector<1x128xf32>
    %288 = arith.addf %287, %286 : vector<1x128xf32>
    %289 = vector.extract_strided_slice %288 {offsets = [0, 0], sizes = [1, 96], strides = [1, 1]} : vector<1x128xf32> to vector<1x96xf32>
    %290 = arith.negf %289 : vector<1x96xf32>
    %291 = math.exp %290 : vector<1x96xf32>
    %cst_43 = arith.constant 1.000000e+00 : f32
    %292 = vector.broadcast %cst_43 : f32 to vector<1x96xf32>
    %293 = arith.addf %292, %291 : vector<1x96xf32>
    %294 = arith.divf %292, %293 : vector<1x96xf32>
    %295 = vector.extract_strided_slice %288 {offsets = [0, 96], sizes = [1, 32], strides = [1, 1]} : vector<1x128xf32> to vector<1x32xf32>
    %296 = math.tanh %295 : vector<1x32xf32>
    %297 = vector.extract_strided_slice %294 {offsets = [0, 0], sizes = [1, 32], strides = [1, 1]} : vector<1x96xf32> to vector<1x32xf32>
    %298 = vector.extract_strided_slice %294 {offsets = [0, 32], sizes = [1, 32], strides = [1, 1]} : vector<1x96xf32> to vector<1x32xf32>
    %299 = vector.extract_strided_slice %294 {offsets = [0, 64], sizes = [1, 32], strides = [1, 1]} : vector<1x96xf32> to vector<1x32xf32>
    %300 = arith.mulf %298, %262 : vector<1x32xf32>
    %301 = arith.mulf %297, %296 : vector<1x32xf32>
    %302 = arith.addf %300, %301 : vector<1x32xf32>
    %303 = math.tanh %302 : vector<1x32xf32>
    %304 = arith.mulf %299, %303 : vector<1x32xf32>
    %c6_i32_44 = arith.constant 6 : i32
    %305 = vector.broadcast %c6_i32_44 : i32 to vector<8x16xi32>
    %306 = arith.cmpi eq, %34, %305 : vector<8x16xi32>
    %307 = vector.extract_strided_slice %304 {offsets = [0, 0], sizes = [1, 16], strides = [1, 1]} : vector<1x32xf32> to vector<1x16xf32>
    %308 = vector.shape_cast %307 : vector<1x16xf32> to vector<1x16xf32>
    %309 = vector.broadcast %308 : vector<1x16xf32> to vector<8x16xf32>
    %310 = arith.select %306, %309, %270 : vector<8x16xi1>, vector<8x16xf32>
    %c1_i32_45 = arith.constant 1 : i32
    %311 = vector.broadcast %c1_i32_45 : i32 to vector<8x16xi32>
    %312 = arith.cmpi eq, %34, %311 : vector<8x16xi32>
    %313 = vector.extract_strided_slice %304 {offsets = [0, 16], sizes = [1, 16], strides = [1, 1]} : vector<1x32xf32> to vector<1x16xf32>
    %314 = vector.shape_cast %313 : vector<1x16xf32> to vector<1x16xf32>
    %315 = vector.broadcast %314 : vector<1x16xf32> to vector<8x16xf32>
    %316 = arith.select %312, %315, %276 : vector<8x16xi1>, vector<8x16xf32>
    %cst_46 = arith.constant 0.000000e+00 : f32
    %317 = vector.shape_cast %304 : vector<1x32xf32> to vector<1x32xf32>
    %318 = vector.broadcast %317 : vector<1x32xf32> to vector<32x32xf32>
    %319 = vector.broadcast %cst_46 : f32 to vector<32x32xf32>
    %320 = arith.select %33, %318, %319 : vector<32x32xi1>, vector<32x32xf32>
    %cst_47 = arith.constant dense<0.000000e+00> : vector<32xf32>
    %321 = vector.multi_reduction <add>, %320, %cst_47 [1] : vector<32x32xf32> to vector<32xf32>
    %322 = vector.shape_cast %321 : vector<32xf32> to vector<32x1xf32>
    %323 = vector.broadcast %322 : vector<32x1xf32> to vector<32x128xf32>
    %324 = arith.mulf %323, %2 : vector<32x128xf32>
    %cst_48 = arith.constant dense<0.000000e+00> : vector<128xf32>
    %325 = vector.multi_reduction <add>, %324, %cst_48 [0] : vector<32x128xf32> to vector<128xf32>
    %326 = vector.shape_cast %325 : vector<128xf32> to vector<1x128xf32>
    %327 = vector.extract_strided_slice %30 {offsets = [7, 0], sizes = [1, 128], strides = [1, 1]} : vector<8x128xf32> to vector<1x128xf32>
    %328 = arith.addf %327, %326 : vector<1x128xf32>
    %329 = vector.extract_strided_slice %328 {offsets = [0, 0], sizes = [1, 96], strides = [1, 1]} : vector<1x128xf32> to vector<1x96xf32>
    %330 = arith.negf %329 : vector<1x96xf32>
    %331 = math.exp %330 : vector<1x96xf32>
    %cst_49 = arith.constant 1.000000e+00 : f32
    %332 = vector.broadcast %cst_49 : f32 to vector<1x96xf32>
    %333 = arith.addf %332, %331 : vector<1x96xf32>
    %334 = arith.divf %332, %333 : vector<1x96xf32>
    %335 = vector.extract_strided_slice %328 {offsets = [0, 96], sizes = [1, 32], strides = [1, 1]} : vector<1x128xf32> to vector<1x32xf32>
    %336 = math.tanh %335 : vector<1x32xf32>
    %337 = vector.extract_strided_slice %334 {offsets = [0, 0], sizes = [1, 32], strides = [1, 1]} : vector<1x96xf32> to vector<1x32xf32>
    %338 = vector.extract_strided_slice %334 {offsets = [0, 32], sizes = [1, 32], strides = [1, 1]} : vector<1x96xf32> to vector<1x32xf32>
    %339 = vector.extract_strided_slice %334 {offsets = [0, 64], sizes = [1, 32], strides = [1, 1]} : vector<1x96xf32> to vector<1x32xf32>
    %340 = arith.mulf %338, %302 : vector<1x32xf32>
    %341 = arith.mulf %337, %336 : vector<1x32xf32>
    %342 = arith.addf %340, %341 : vector<1x32xf32>
    %343 = math.tanh %342 : vector<1x32xf32>
    %344 = arith.mulf %339, %343 : vector<1x32xf32>
    %c7_i32_50 = arith.constant 7 : i32
    %345 = vector.broadcast %c7_i32_50 : i32 to vector<8x16xi32>
    %346 = arith.cmpi eq, %34, %345 : vector<8x16xi32>
    %347 = vector.extract_strided_slice %344 {offsets = [0, 0], sizes = [1, 16], strides = [1, 1]} : vector<1x32xf32> to vector<1x16xf32>
    %348 = vector.shape_cast %347 : vector<1x16xf32> to vector<1x16xf32>
    %349 = vector.broadcast %348 : vector<1x16xf32> to vector<8x16xf32>
    %350 = arith.select %346, %349, %310 : vector<8x16xi1>, vector<8x16xf32>
    %c0_i32_51 = arith.constant 0 : i32
    %351 = vector.broadcast %c0_i32_51 : i32 to vector<8x16xi32>
    %352 = arith.cmpi eq, %34, %351 : vector<8x16xi32>
    %353 = vector.extract_strided_slice %344 {offsets = [0, 16], sizes = [1, 16], strides = [1, 1]} : vector<1x32xf32> to vector<1x16xf32>
    %354 = vector.shape_cast %353 : vector<1x16xf32> to vector<1x16xf32>
    %355 = vector.broadcast %354 : vector<1x16xf32> to vector<8x16xf32>
    %356 = arith.select %352, %355, %316 : vector<8x16xi1>, vector<8x16xf32>
    %cst_52 = arith.constant dense<0.000000e+00> : vector<8x6xf32>
    %357 = tpu.matmul %350, %9, %cst_52 {dimension_numbers = #tpu.dot_dimension_numbers<[1], [0], [0], [1], [0, 0, 1, 1], [], []>} : vector<8x16xf32>, vector<16x6xf32>, vector<8x6xf32> -> vector<8x6xf32>
    %cst_53 = arith.constant dense<0.000000e+00> : vector<8x6xf32>
    %358 = tpu.matmul %356, %11, %cst_53 {dimension_numbers = #tpu.dot_dimension_numbers<[1], [0], [0], [1], [0, 0, 1, 1], [], []>} : vector<8x16xf32>, vector<16x6xf32>, vector<8x6xf32> -> vector<8x6xf32>
    %359 = arith.addf %357, %358 : vector<8x6xf32>
    %360 = vector.broadcast %7 : vector<1x6xf32> to vector<8x6xf32>
    %361 = arith.addf %359, %360 : vector<8x6xf32>
    %362 = tpu.iota {dimensions = array<i32: 1>} : vector<1x6xi32>
    %363 = arith.sitofp %362 : vector<1x6xi32> to vector<1x6xf32>
    %364 = tpu.iota {dimensions = array<i32: 0>} : vector<6x1xi32>
    %365 = arith.sitofp %364 : vector<6x1xi32> to vector<6x1xf32>
    %366 = tpu.iota {dimensions = array<i32: 1>} : vector<6x6xi32>
    %367 = arith.sitofp %366 : vector<6x6xi32> to vector<6x6xf32>
    %368 = tpu.iota {dimensions = array<i32: 0>} : vector<6x6xi32>
    %369 = tpu.iota {dimensions = array<i32: 1>} : vector<6x6xi32>
    %370 = arith.cmpi eq, %368, %369 : vector<6x6xi32>
    %c4_i32_54 = arith.constant 4 : i32
    %371 = vector.broadcast %c4_i32_54 : i32 to vector<1x6xi32>
    %372 = arith.cmpi eq, %362, %371 : vector<1x6xi32>
    %cst_55 = arith.constant 0.000000e+00 : f32
    %cst_56 = arith.constant -1.000000e+04 : f32
    %373 = vector.broadcast %cst_55 : f32 to vector<1x6xf32>
    %374 = vector.broadcast %cst_56 : f32 to vector<1x6xf32>
    %375 = arith.select %372, %373, %374 : vector<1x6xi1>, vector<1x6xf32>
    %376 = vector.broadcast %375 : vector<1x6xf32> to vector<6x6xf32>
    %377 = arith.addf %376, %13 : vector<6x6xf32>
    %cst_57 = arith.constant dense<0xFF800000> : vector<6xf32>
    %378 = vector.multi_reduction <maximumf>, %377, %cst_57 [1] : vector<6x6xf32> to vector<6xf32>
    %379 = vector.shape_cast %378 : vector<6xf32> to vector<6x1xf32>
    %cst_58 = arith.constant 0.000000e+00 : f32
    %380 = vector.shape_cast %379 : vector<6x1xf32> to vector<6x1xf32>
    %381 = vector.broadcast %380 : vector<6x1xf32> to vector<6x6xf32>
    %382 = vector.broadcast %cst_58 : f32 to vector<6x6xf32>
    %383 = arith.select %370, %381, %382 : vector<6x6xi1>, vector<6x6xf32>
    %cst_59 = arith.constant dense<0.000000e+00> : vector<6xf32>
    %384 = vector.multi_reduction <add>, %383, %cst_59 [0] : vector<6x6xf32> to vector<6xf32>
    %385 = vector.shape_cast %384 : vector<6xf32> to vector<1x6xf32>
    %386 = vector.extract_strided_slice %361 {offsets = [0, 0], sizes = [1, 6], strides = [1, 1]} : vector<8x6xf32> to vector<1x6xf32>
    %387 = arith.addf %385, %386 : vector<1x6xf32>
    %388 = vector.broadcast %387 : vector<1x6xf32> to vector<6x6xf32>
    %389 = arith.addf %388, %13 : vector<6x6xf32>
    %cst_60 = arith.constant dense<0xFF800000> : vector<6xf32>
    %390 = vector.multi_reduction <maximumf>, %389, %cst_60 [1] : vector<6x6xf32> to vector<6xf32>
    %391 = vector.shape_cast %390 : vector<6xf32> to vector<6x1xf32>
    %392 = vector.broadcast %391 : vector<6x1xf32> to vector<6x6xf32>
    %393 = arith.cmpf oeq, %389, %392 : vector<6x6xf32>
    %cst_61 = arith.constant 6.000000e+00 : f32
    %394 = vector.broadcast %cst_61 : f32 to vector<6x6xf32>
    %395 = arith.select %393, %367, %394 : vector<6x6xi1>, vector<6x6xf32>
    %cst_62 = arith.constant dense<0x7F800000> : vector<6xf32>
    %396 = vector.multi_reduction <minimumf>, %395, %cst_62 [1] : vector<6x6xf32> to vector<6xf32>
    %397 = vector.shape_cast %396 : vector<6xf32> to vector<6x1xf32>
    %cst_63 = arith.constant 0.000000e+00 : f32
    %398 = vector.shape_cast %391 : vector<6x1xf32> to vector<6x1xf32>
    %399 = vector.broadcast %398 : vector<6x1xf32> to vector<6x6xf32>
    %400 = vector.broadcast %cst_63 : f32 to vector<6x6xf32>
    %401 = arith.select %370, %399, %400 : vector<6x6xi1>, vector<6x6xf32>
    %cst_64 = arith.constant dense<0.000000e+00> : vector<6xf32>
    %402 = vector.multi_reduction <add>, %401, %cst_64 [0] : vector<6x6xf32> to vector<6xf32>
    %403 = vector.shape_cast %402 : vector<6xf32> to vector<1x6xf32>
    %404 = vector.extract_strided_slice %361 {offsets = [1, 0], sizes = [1, 6], strides = [1, 1]} : vector<8x6xf32> to vector<1x6xf32>
    %405 = arith.addf %403, %404 : vector<1x6xf32>
    %406 = vector.broadcast %405 : vector<1x6xf32> to vector<6x6xf32>
    %407 = arith.addf %406, %13 : vector<6x6xf32>
    %cst_65 = arith.constant dense<0xFF800000> : vector<6xf32>
    %408 = vector.multi_reduction <maximumf>, %407, %cst_65 [1] : vector<6x6xf32> to vector<6xf32>
    %409 = vector.shape_cast %408 : vector<6xf32> to vector<6x1xf32>
    %410 = vector.broadcast %409 : vector<6x1xf32> to vector<6x6xf32>
    %411 = arith.cmpf oeq, %407, %410 : vector<6x6xf32>
    %cst_66 = arith.constant 6.000000e+00 : f32
    %412 = vector.broadcast %cst_66 : f32 to vector<6x6xf32>
    %413 = arith.select %411, %367, %412 : vector<6x6xi1>, vector<6x6xf32>
    %cst_67 = arith.constant dense<0x7F800000> : vector<6xf32>
    %414 = vector.multi_reduction <minimumf>, %413, %cst_67 [1] : vector<6x6xf32> to vector<6xf32>
    %415 = vector.shape_cast %414 : vector<6xf32> to vector<6x1xf32>
    %cst_68 = arith.constant 0.000000e+00 : f32
    %416 = vector.shape_cast %409 : vector<6x1xf32> to vector<6x1xf32>
    %417 = vector.broadcast %416 : vector<6x1xf32> to vector<6x6xf32>
    %418 = vector.broadcast %cst_68 : f32 to vector<6x6xf32>
    %419 = arith.select %370, %417, %418 : vector<6x6xi1>, vector<6x6xf32>
    %cst_69 = arith.constant dense<0.000000e+00> : vector<6xf32>
    %420 = vector.multi_reduction <add>, %419, %cst_69 [0] : vector<6x6xf32> to vector<6xf32>
    %421 = vector.shape_cast %420 : vector<6xf32> to vector<1x6xf32>
    %422 = vector.extract_strided_slice %361 {offsets = [2, 0], sizes = [1, 6], strides = [1, 1]} : vector<8x6xf32> to vector<1x6xf32>
    %423 = arith.addf %421, %422 : vector<1x6xf32>
    %424 = vector.broadcast %423 : vector<1x6xf32> to vector<6x6xf32>
    %425 = arith.addf %424, %13 : vector<6x6xf32>
    %cst_70 = arith.constant dense<0xFF800000> : vector<6xf32>
    %426 = vector.multi_reduction <maximumf>, %425, %cst_70 [1] : vector<6x6xf32> to vector<6xf32>
    %427 = vector.shape_cast %426 : vector<6xf32> to vector<6x1xf32>
    %428 = vector.broadcast %427 : vector<6x1xf32> to vector<6x6xf32>
    %429 = arith.cmpf oeq, %425, %428 : vector<6x6xf32>
    %cst_71 = arith.constant 6.000000e+00 : f32
    %430 = vector.broadcast %cst_71 : f32 to vector<6x6xf32>
    %431 = arith.select %429, %367, %430 : vector<6x6xi1>, vector<6x6xf32>
    %cst_72 = arith.constant dense<0x7F800000> : vector<6xf32>
    %432 = vector.multi_reduction <minimumf>, %431, %cst_72 [1] : vector<6x6xf32> to vector<6xf32>
    %433 = vector.shape_cast %432 : vector<6xf32> to vector<6x1xf32>
    %cst_73 = arith.constant 0.000000e+00 : f32
    %434 = vector.shape_cast %427 : vector<6x1xf32> to vector<6x1xf32>
    %435 = vector.broadcast %434 : vector<6x1xf32> to vector<6x6xf32>
    %436 = vector.broadcast %cst_73 : f32 to vector<6x6xf32>
    %437 = arith.select %370, %435, %436 : vector<6x6xi1>, vector<6x6xf32>
    %cst_74 = arith.constant dense<0.000000e+00> : vector<6xf32>
    %438 = vector.multi_reduction <add>, %437, %cst_74 [0] : vector<6x6xf32> to vector<6xf32>
    %439 = vector.shape_cast %438 : vector<6xf32> to vector<1x6xf32>
    %440 = vector.extract_strided_slice %361 {offsets = [3, 0], sizes = [1, 6], strides = [1, 1]} : vector<8x6xf32> to vector<1x6xf32>
    %441 = arith.addf %439, %440 : vector<1x6xf32>
    %442 = vector.broadcast %441 : vector<1x6xf32> to vector<6x6xf32>
    %443 = arith.addf %442, %13 : vector<6x6xf32>
    %cst_75 = arith.constant dense<0xFF800000> : vector<6xf32>
    %444 = vector.multi_reduction <maximumf>, %443, %cst_75 [1] : vector<6x6xf32> to vector<6xf32>
    %445 = vector.shape_cast %444 : vector<6xf32> to vector<6x1xf32>
    %446 = vector.broadcast %445 : vector<6x1xf32> to vector<6x6xf32>
    %447 = arith.cmpf oeq, %443, %446 : vector<6x6xf32>
    %cst_76 = arith.constant 6.000000e+00 : f32
    %448 = vector.broadcast %cst_76 : f32 to vector<6x6xf32>
    %449 = arith.select %447, %367, %448 : vector<6x6xi1>, vector<6x6xf32>
    %cst_77 = arith.constant dense<0x7F800000> : vector<6xf32>
    %450 = vector.multi_reduction <minimumf>, %449, %cst_77 [1] : vector<6x6xf32> to vector<6xf32>
    %451 = vector.shape_cast %450 : vector<6xf32> to vector<6x1xf32>
    %cst_78 = arith.constant 0.000000e+00 : f32
    %452 = vector.shape_cast %445 : vector<6x1xf32> to vector<6x1xf32>
    %453 = vector.broadcast %452 : vector<6x1xf32> to vector<6x6xf32>
    %454 = vector.broadcast %cst_78 : f32 to vector<6x6xf32>
    %455 = arith.select %370, %453, %454 : vector<6x6xi1>, vector<6x6xf32>
    %cst_79 = arith.constant dense<0.000000e+00> : vector<6xf32>
    %456 = vector.multi_reduction <add>, %455, %cst_79 [0] : vector<6x6xf32> to vector<6xf32>
    %457 = vector.shape_cast %456 : vector<6xf32> to vector<1x6xf32>
    %458 = vector.extract_strided_slice %361 {offsets = [4, 0], sizes = [1, 6], strides = [1, 1]} : vector<8x6xf32> to vector<1x6xf32>
    %459 = arith.addf %457, %458 : vector<1x6xf32>
    %460 = vector.broadcast %459 : vector<1x6xf32> to vector<6x6xf32>
    %461 = arith.addf %460, %13 : vector<6x6xf32>
    %cst_80 = arith.constant dense<0xFF800000> : vector<6xf32>
    %462 = vector.multi_reduction <maximumf>, %461, %cst_80 [1] : vector<6x6xf32> to vector<6xf32>
    %463 = vector.shape_cast %462 : vector<6xf32> to vector<6x1xf32>
    %464 = vector.broadcast %463 : vector<6x1xf32> to vector<6x6xf32>
    %465 = arith.cmpf oeq, %461, %464 : vector<6x6xf32>
    %cst_81 = arith.constant 6.000000e+00 : f32
    %466 = vector.broadcast %cst_81 : f32 to vector<6x6xf32>
    %467 = arith.select %465, %367, %466 : vector<6x6xi1>, vector<6x6xf32>
    %cst_82 = arith.constant dense<0x7F800000> : vector<6xf32>
    %468 = vector.multi_reduction <minimumf>, %467, %cst_82 [1] : vector<6x6xf32> to vector<6xf32>
    %469 = vector.shape_cast %468 : vector<6xf32> to vector<6x1xf32>
    %cst_83 = arith.constant 0.000000e+00 : f32
    %470 = vector.shape_cast %463 : vector<6x1xf32> to vector<6x1xf32>
    %471 = vector.broadcast %470 : vector<6x1xf32> to vector<6x6xf32>
    %472 = vector.broadcast %cst_83 : f32 to vector<6x6xf32>
    %473 = arith.select %370, %471, %472 : vector<6x6xi1>, vector<6x6xf32>
    %cst_84 = arith.constant dense<0.000000e+00> : vector<6xf32>
    %474 = vector.multi_reduction <add>, %473, %cst_84 [0] : vector<6x6xf32> to vector<6xf32>
    %475 = vector.shape_cast %474 : vector<6xf32> to vector<1x6xf32>
    %476 = vector.extract_strided_slice %361 {offsets = [5, 0], sizes = [1, 6], strides = [1, 1]} : vector<8x6xf32> to vector<1x6xf32>
    %477 = arith.addf %475, %476 : vector<1x6xf32>
    %478 = vector.broadcast %477 : vector<1x6xf32> to vector<6x6xf32>
    %479 = arith.addf %478, %13 : vector<6x6xf32>
    %cst_85 = arith.constant dense<0xFF800000> : vector<6xf32>
    %480 = vector.multi_reduction <maximumf>, %479, %cst_85 [1] : vector<6x6xf32> to vector<6xf32>
    %481 = vector.shape_cast %480 : vector<6xf32> to vector<6x1xf32>
    %482 = vector.broadcast %481 : vector<6x1xf32> to vector<6x6xf32>
    %483 = arith.cmpf oeq, %479, %482 : vector<6x6xf32>
    %cst_86 = arith.constant 6.000000e+00 : f32
    %484 = vector.broadcast %cst_86 : f32 to vector<6x6xf32>
    %485 = arith.select %483, %367, %484 : vector<6x6xi1>, vector<6x6xf32>
    %cst_87 = arith.constant dense<0x7F800000> : vector<6xf32>
    %486 = vector.multi_reduction <minimumf>, %485, %cst_87 [1] : vector<6x6xf32> to vector<6xf32>
    %487 = vector.shape_cast %486 : vector<6xf32> to vector<6x1xf32>
    %cst_88 = arith.constant 0.000000e+00 : f32
    %488 = vector.shape_cast %481 : vector<6x1xf32> to vector<6x1xf32>
    %489 = vector.broadcast %488 : vector<6x1xf32> to vector<6x6xf32>
    %490 = vector.broadcast %cst_88 : f32 to vector<6x6xf32>
    %491 = arith.select %370, %489, %490 : vector<6x6xi1>, vector<6x6xf32>
    %cst_89 = arith.constant dense<0.000000e+00> : vector<6xf32>
    %492 = vector.multi_reduction <add>, %491, %cst_89 [0] : vector<6x6xf32> to vector<6xf32>
    %493 = vector.shape_cast %492 : vector<6xf32> to vector<1x6xf32>
    %494 = vector.extract_strided_slice %361 {offsets = [6, 0], sizes = [1, 6], strides = [1, 1]} : vector<8x6xf32> to vector<1x6xf32>
    %495 = arith.addf %493, %494 : vector<1x6xf32>
    %496 = vector.broadcast %495 : vector<1x6xf32> to vector<6x6xf32>
    %497 = arith.addf %496, %13 : vector<6x6xf32>
    %cst_90 = arith.constant dense<0xFF800000> : vector<6xf32>
    %498 = vector.multi_reduction <maximumf>, %497, %cst_90 [1] : vector<6x6xf32> to vector<6xf32>
    %499 = vector.shape_cast %498 : vector<6xf32> to vector<6x1xf32>
    %500 = vector.broadcast %499 : vector<6x1xf32> to vector<6x6xf32>
    %501 = arith.cmpf oeq, %497, %500 : vector<6x6xf32>
    %cst_91 = arith.constant 6.000000e+00 : f32
    %502 = vector.broadcast %cst_91 : f32 to vector<6x6xf32>
    %503 = arith.select %501, %367, %502 : vector<6x6xi1>, vector<6x6xf32>
    %cst_92 = arith.constant dense<0x7F800000> : vector<6xf32>
    %504 = vector.multi_reduction <minimumf>, %503, %cst_92 [1] : vector<6x6xf32> to vector<6xf32>
    %505 = vector.shape_cast %504 : vector<6xf32> to vector<6x1xf32>
    %cst_93 = arith.constant 0.000000e+00 : f32
    %506 = vector.shape_cast %499 : vector<6x1xf32> to vector<6x1xf32>
    %507 = vector.broadcast %506 : vector<6x1xf32> to vector<6x6xf32>
    %508 = vector.broadcast %cst_93 : f32 to vector<6x6xf32>
    %509 = arith.select %370, %507, %508 : vector<6x6xi1>, vector<6x6xf32>
    %cst_94 = arith.constant dense<0.000000e+00> : vector<6xf32>
    %510 = vector.multi_reduction <add>, %509, %cst_94 [0] : vector<6x6xf32> to vector<6xf32>
    %511 = vector.shape_cast %510 : vector<6xf32> to vector<1x6xf32>
    %512 = vector.extract_strided_slice %361 {offsets = [7, 0], sizes = [1, 6], strides = [1, 1]} : vector<8x6xf32> to vector<1x6xf32>
    %513 = arith.addf %511, %512 : vector<1x6xf32>
    %514 = vector.extract_strided_slice %13 {offsets = [5, 0], sizes = [1, 6], strides = [1, 1]} : vector<6x6xf32> to vector<1x6xf32>
    %515 = arith.addf %513, %514 : vector<1x6xf32>
    %cst_95 = arith.constant dense<0xFF800000> : vector<1xf32>
    %516 = vector.multi_reduction <maximumf>, %515, %cst_95 [1] : vector<1x6xf32> to vector<1xf32>
    %517 = vector.shape_cast %516 : vector<1xf32> to vector<1x1xf32>
    %518 = vector.broadcast %517 : vector<1x1xf32> to vector<1x6xf32>
    %519 = arith.cmpf oeq, %515, %518 : vector<1x6xf32>
    %cst_96 = arith.constant 6.000000e+00 : f32
    %520 = vector.broadcast %cst_96 : f32 to vector<1x6xf32>
    %521 = arith.select %519, %363, %520 : vector<1x6xi1>, vector<1x6xf32>
    %cst_97 = arith.constant dense<0x7F800000> : vector<1xf32>
    %522 = vector.multi_reduction <minimumf>, %521, %cst_97 [1] : vector<1x6xf32> to vector<1xf32>
    %523 = vector.shape_cast %522 : vector<1xf32> to vector<1x1xf32>
    %c0_98 = arith.constant 0 : index
    %c0_99 = arith.constant 0 : index
    %524 = vector.load %arg2[%c0_98, %c0_99] : memref<1x1xf32, #tpu.memory_space<vmem>>, vector<1x1xf32>
    tpu.vector_store %arg2[%c0_98, %c0_99], %517 {strides = array<i32>} : memref<1x1xf32, #tpu.memory_space<vmem>>, vector<1x1xf32>,
    %525 = tpu.iota {dimensions = array<i32: 1>} : vector<1x8xi32>
    %c7_i32_100 = arith.constant 7 : i32
    %526 = vector.broadcast %c7_i32_100 : i32 to vector<1x8xi32>
    %527 = arith.cmpi eq, %525, %526 : vector<1x8xi32>
    %cst_101 = arith.constant 0.000000e+00 : f32
    %528 = vector.shape_cast %523 : vector<1x1xf32> to vector<1x1xf32>
    %529 = vector.broadcast %528 : vector<1x1xf32> to vector<1x8xf32>
    %530 = vector.broadcast %cst_101 : f32 to vector<1x8xf32>
    %531 = arith.select %527, %529, %530 : vector<1x8xi1>, vector<1x8xf32>
    %532 = vector.broadcast %523 : vector<1x1xf32> to vector<6x1xf32>
    %533 = arith.cmpf oeq, %365, %532 : vector<6x1xf32>
    %cst_102 = arith.constant 0.000000e+00 : f32
    %534 = vector.broadcast %cst_102 : f32 to vector<6x1xf32>
    %535 = arith.select %533, %505, %534 : vector<6x1xi1>, vector<6x1xf32>
    %cst_103 = arith.constant dense<0.000000e+00> : vector<1xf32>
    %536 = vector.multi_reduction <add>, %535, %cst_103 [0] : vector<6x1xf32> to vector<1xf32>
    %537 = vector.shape_cast %536 : vector<1xf32> to vector<1x1xf32>
    %c6_i32_104 = arith.constant 6 : i32
    %538 = vector.broadcast %c6_i32_104 : i32 to vector<1x8xi32>
    %539 = arith.cmpi eq, %525, %538 : vector<1x8xi32>
    %540 = vector.shape_cast %537 : vector<1x1xf32> to vector<1x1xf32>
    %541 = vector.broadcast %540 : vector<1x1xf32> to vector<1x8xf32>
    %542 = arith.select %539, %541, %531 : vector<1x8xi1>, vector<1x8xf32>
    %543 = vector.broadcast %537 : vector<1x1xf32> to vector<6x1xf32>
    %544 = arith.cmpf oeq, %365, %543 : vector<6x1xf32>
    %cst_105 = arith.constant 0.000000e+00 : f32
    %545 = vector.broadcast %cst_105 : f32 to vector<6x1xf32>
    %546 = arith.select %544, %487, %545 : vector<6x1xi1>, vector<6x1xf32>
    %cst_106 = arith.constant dense<0.000000e+00> : vector<1xf32>
    %547 = vector.multi_reduction <add>, %546, %cst_106 [0] : vector<6x1xf32> to vector<1xf32>
    %548 = vector.shape_cast %547 : vector<1xf32> to vector<1x1xf32>
    %c5_i32_107 = arith.constant 5 : i32
    %549 = vector.broadcast %c5_i32_107 : i32 to vector<1x8xi32>
    %550 = arith.cmpi eq, %525, %549 : vector<1x8xi32>
    %551 = vector.shape_cast %548 : vector<1x1xf32> to vector<1x1xf32>
    %552 = vector.broadcast %551 : vector<1x1xf32> to vector<1x8xf32>
    %553 = arith.select %550, %552, %542 : vector<1x8xi1>, vector<1x8xf32>
    %554 = vector.broadcast %548 : vector<1x1xf32> to vector<6x1xf32>
    %555 = arith.cmpf oeq, %365, %554 : vector<6x1xf32>
    %cst_108 = arith.constant 0.000000e+00 : f32
    %556 = vector.broadcast %cst_108 : f32 to vector<6x1xf32>
    %557 = arith.select %555, %469, %556 : vector<6x1xi1>, vector<6x1xf32>
    %cst_109 = arith.constant dense<0.000000e+00> : vector<1xf32>
    %558 = vector.multi_reduction <add>, %557, %cst_109 [0] : vector<6x1xf32> to vector<1xf32>
    %559 = vector.shape_cast %558 : vector<1xf32> to vector<1x1xf32>
    %c4_i32_110 = arith.constant 4 : i32
    %560 = vector.broadcast %c4_i32_110 : i32 to vector<1x8xi32>
    %561 = arith.cmpi eq, %525, %560 : vector<1x8xi32>
    %562 = vector.shape_cast %559 : vector<1x1xf32> to vector<1x1xf32>
    %563 = vector.broadcast %562 : vector<1x1xf32> to vector<1x8xf32>
    %564 = arith.select %561, %563, %553 : vector<1x8xi1>, vector<1x8xf32>
    %565 = vector.broadcast %559 : vector<1x1xf32> to vector<6x1xf32>
    %566 = arith.cmpf oeq, %365, %565 : vector<6x1xf32>
    %cst_111 = arith.constant 0.000000e+00 : f32
    %567 = vector.broadcast %cst_111 : f32 to vector<6x1xf32>
    %568 = arith.select %566, %451, %567 : vector<6x1xi1>, vector<6x1xf32>
    %cst_112 = arith.constant dense<0.000000e+00> : vector<1xf32>
    %569 = vector.multi_reduction <add>, %568, %cst_112 [0] : vector<6x1xf32> to vector<1xf32>
    %570 = vector.shape_cast %569 : vector<1xf32> to vector<1x1xf32>
    %c3_i32_113 = arith.constant 3 : i32
    %571 = vector.broadcast %c3_i32_113 : i32 to vector<1x8xi32>
    %572 = arith.cmpi eq, %525, %571 : vector<1x8xi32>
    %573 = vector.shape_cast %570 : vector<1x1xf32> to vector<1x1xf32>
    %574 = vector.broadcast %573 : vector<1x1xf32> to vector<1x8xf32>
    %575 = arith.select %572, %574, %564 : vector<1x8xi1>, vector<1x8xf32>
    %576 = vector.broadcast %570 : vector<1x1xf32> to vector<6x1xf32>
    %577 = arith.cmpf oeq, %365, %576 : vector<6x1xf32>
    %cst_114 = arith.constant 0.000000e+00 : f32
    %578 = vector.broadcast %cst_114 : f32 to vector<6x1xf32>
    %579 = arith.select %577, %433, %578 : vector<6x1xi1>, vector<6x1xf32>
    %cst_115 = arith.constant dense<0.000000e+00> : vector<1xf32>
    %580 = vector.multi_reduction <add>, %579, %cst_115 [0] : vector<6x1xf32> to vector<1xf32>
    %581 = vector.shape_cast %580 : vector<1xf32> to vector<1x1xf32>
    %c2_i32_116 = arith.constant 2 : i32
    %582 = vector.broadcast %c2_i32_116 : i32 to vector<1x8xi32>
    %583 = arith.cmpi eq, %525, %582 : vector<1x8xi32>
    %584 = vector.shape_cast %581 : vector<1x1xf32> to vector<1x1xf32>
    %585 = vector.broadcast %584 : vector<1x1xf32> to vector<1x8xf32>
    %586 = arith.select %583, %585, %575 : vector<1x8xi1>, vector<1x8xf32>
    %587 = vector.broadcast %581 : vector<1x1xf32> to vector<6x1xf32>
    %588 = arith.cmpf oeq, %365, %587 : vector<6x1xf32>
    %cst_117 = arith.constant 0.000000e+00 : f32
    %589 = vector.broadcast %cst_117 : f32 to vector<6x1xf32>
    %590 = arith.select %588, %415, %589 : vector<6x1xi1>, vector<6x1xf32>
    %cst_118 = arith.constant dense<0.000000e+00> : vector<1xf32>
    %591 = vector.multi_reduction <add>, %590, %cst_118 [0] : vector<6x1xf32> to vector<1xf32>
    %592 = vector.shape_cast %591 : vector<1xf32> to vector<1x1xf32>
    %c1_i32_119 = arith.constant 1 : i32
    %593 = vector.broadcast %c1_i32_119 : i32 to vector<1x8xi32>
    %594 = arith.cmpi eq, %525, %593 : vector<1x8xi32>
    %595 = vector.shape_cast %592 : vector<1x1xf32> to vector<1x1xf32>
    %596 = vector.broadcast %595 : vector<1x1xf32> to vector<1x8xf32>
    %597 = arith.select %594, %596, %586 : vector<1x8xi1>, vector<1x8xf32>
    %598 = vector.broadcast %592 : vector<1x1xf32> to vector<6x1xf32>
    %599 = arith.cmpf oeq, %365, %598 : vector<6x1xf32>
    %cst_120 = arith.constant 0.000000e+00 : f32
    %600 = vector.broadcast %cst_120 : f32 to vector<6x1xf32>
    %601 = arith.select %599, %397, %600 : vector<6x1xi1>, vector<6x1xf32>
    %cst_121 = arith.constant dense<0.000000e+00> : vector<1xf32>
    %602 = vector.multi_reduction <add>, %601, %cst_121 [0] : vector<6x1xf32> to vector<1xf32>
    %603 = vector.shape_cast %602 : vector<1xf32> to vector<1x1xf32>
    %c0_i32_122 = arith.constant 0 : i32
    %604 = vector.broadcast %c0_i32_122 : i32 to vector<1x8xi32>
    %605 = arith.cmpi eq, %525, %604 : vector<1x8xi32>
    %606 = vector.shape_cast %603 : vector<1x1xf32> to vector<1x1xf32>
    %607 = vector.broadcast %606 : vector<1x1xf32> to vector<1x8xf32>
    %608 = arith.select %605, %607, %597 : vector<1x8xi1>, vector<1x8xf32>
    %609 = arith.fptosi %608 : vector<1x8xf32> to vector<1x8xi32>
    %c0_123 = arith.constant 0 : index
    %c0_124 = arith.constant 0 : index
    %610 = vector.load %arg3[%c0_123, %c0_124] : memref<1x8xi32, #tpu.memory_space<vmem>>, vector<1x8xi32>
    tpu.vector_store %arg3[%c0_123, %c0_124], %609 {strides = array<i32>} : memref<1x8xi32, #tpu.memory_space<vmem>>, vector<1x8xi32>,
    return
  }
}

</mosaic_0001>

<bundles_post_ra>
// kernel: bilstm_crf_forward.1
= control target key start
LH: loop header
LB: loop body
LE: loop exit
PB: predicated region body
PF: predicated region fallthrough
CT: control target
= control target key end

     0   :  { %9 = vsyncpa [#allocation3], 0  ;;  %s1752_s0 = inlined_call_operand.vmem [shape: s32[8,2], index: 0, kind: input, shape index: {}]   ;;  %s1753_s1 = inlined_call_operand.hbm [shape: f32[176,128], index: 1, kind: input, shape index: {}]   ;;  %s1754_s2 = inlined_call_operand.hbm [shape: f32[1,1], index: 2, kind: output, shape index: {0}]   ;;  %s1755_s3 = inlined_call_operand.hbm [shape: s32[1,8], index: 3, kind: output, shape index: {1}]  }
   0x1   :  { %10 = vsyncpa [#allocation4], 0 }
   0x2   :  { %11 = vsyncpa [#allocation7], 0  ;;  %s18_s14 = sshll.u32 %s1753_s1, 4  ;;  %s1261_s15 = smov [#allocation2]   ;;  %s19_s14 = int_to_ptr.hbm [resolvable:$true] %s18_s14 }
   0x3   :  { %s20_s16 = sshll.u32 %s1261_s15, 4  ;;  %s1262_s17 = smov 128   ;;  %s21_s16 = int_to_ptr.vmem [resolvable:$true] %s20_s16 }
   0x4   :  { %s1263_s18 = smov 8  }
   0x5   :  { %26 = dma.hbm_to_vmem [thread:$0]  %s19_s14, 2816, %s21_s16, [#allocation3], %s1262_s17, %s1262_s17, %s1263_s18  }
   0x6   :  { %1255 = dma.done.wait [#allocation3], 2816  }
   0x7   :  { %1256 = vsyncadd [#allocation3], 4294964480  ;;  %v54_v0 = vlaneseq  ;;  %v1264_v1 = vmov 0   ;;  %v53_v5 = vld [vmem:[%s1752_s0] sm:$0xff]  ;;  %v36_v10 = vld [vmem:[#allocation2 + $0x28] sm:$0xff]  ;;  %vm131_vm2 = vcmask 261120  }
   0x8   :  { %1116 = vset.pattern.permute.xlu0 %v1264_v1  ;;  %v1304_v6 = vld [vmem:[#allocation2 + $0x80] sm:$0xff]  ;;  %105 = vmatpush.msra.mxu1 %v36_v10  ;;  %v34_v16 = vld [vmem:[#allocation2 + $0x18] sm:$0xff]  ;;  %v33_v21 = vld [vmem:[#allocation2 + $0x10] sm:$0xff]  ;;  %v1265_v24 = vmov 1   ;;  %s1266_s0 = smov 32   ;;  %vm68_vm5 = vcmask 392192  }
   0x9   :  { %v1296_v2 = vshrl.u32 %v54_v0, 7  ;;  %v1298_v3 = vand.u32 127, %v54_v0  ;;  %57 = vperm.xlu0 %1116, %v53_v5   ;;  %v126_v12 = vperm.slane %v1304_v6, 1  ;;  %v35_v13 = vld [vmem:[#allocation2 + $0x20] sm:$0xff]  ;;  %v32_v27 = vld [vmem:[#allocation2 + $0x8] sm:$0xff]  ;;  %v42_v28 = vld [vmem:[#allocation2 + $0x58] sm:$0xff] }
   0xa   :  { %106 = vmatpush.msra.mxu1 %v35_v13  ;;  %82 = vmatpush.msra.mxu0 %v42_v28  ;;  %v31_v29 = vld [vmem:[#allocation2] sm:$0xff]  ;;  %v41_v30 = vld [vmem:[#allocation2 + $0x50] sm:$0xff]  ;;  %v40_v31 = vld [vmem:[#allocation2 + $0x48] sm:$0xff]  ;;  %v179_v35 = vrot.slane %v1304_v6, 2  ;;  %v1267_v37 = vmov 0.0   ;;  %v115_v61 = vperm.slane %v1304_v6, 0 }
   0xb   :  { %v120_v4 = vadd.s32 16, %v1296_v2  ;;  %vm1308_vm0 = vcmp.eq.s32.totalorder %v1296_v2, %v1298_v3  ;;  %v119_v9 = vadd.s32 8, %v1296_v2  ;;  %v121_v11 = vadd.s32 24, %v1296_v2  ;;  %v39_v32 = vld [vmem:[#allocation2 + $0x40] sm:$0xff]  ;;  %v38_v33 = vld [vmem:[#allocation2 + $0x38] sm:$0xff]  ;;  %v37_v34 = vld [vmem:[#allocation2 + $0x30] sm:$0xff] }
   0xc   :  { %v127_v14 = vsel %vm1308_vm0, %v126_v12, 0.0  ;;  %107 = vmatpush.msra.mxu1 %v34_v16  ;;  %83 = vmatpush.msra.mxu0 %v41_v30  ;;  %v1346_v43 = vld [vmem:[#allocation2 + $0x60] sm:$0xff]  ;;  %v1348_v45 = vld [vmem:[#allocation2 + $0x68] sm:$0xff]  ;;  %v1352_v48 = vld [vmem:[#allocation2 + $0x70] sm:$0xff]  ;;  %s1268_s20 = smov 64   ;;  %s1269_s21 = smov 48  }
   0xd   :  { %vm1313_vm1 = vcmp.eq.s32.totalorder %v120_v4, %v1298_v3  ;;  %v132_v17 = vsel %vm131_vm2, %v127_v14, 0.0  ;;  %vm1327_vm3 = vcmp.eq.s32.totalorder %v119_v9, %v1298_v3  ;;  %vm1332_vm4 = vcmp.eq.s32.totalorder %v121_v11, %v1298_v3  ;;  %v1355_v52 = vld [vmem:[#allocation2 + $0x78] sm:$0xff]  ;;  %s1059_s24 = sshll.u32 %s1754_s2, 4  ;;  %s1271_s25 = smov [#allocation5]   ;;  %s1060_s24 = int_to_ptr.hbm [resolvable:$true] %s1059_s24 }
   0xe   :  { %v129_v15 = vsel %vm1313_vm1, %v126_v12, 0.0  ;;  %133 = vadd.xlane.f32.xlu1 %v132_v17  ;;  %v128_v22 = vsel %vm1327_vm3, %v126_v12, 0.0  ;;  %v130_v23 = vsel %vm1332_vm4, %v126_v12, 0.0  ;;  %108 = vmatpush.msra.mxu1 %v33_v21  ;;  %s1057_s26 = sshll.u32 %s1271_s25, 4  ;;  %s1272_s2 = smov [#allocation6]   ;;  %s1058_s26 = int_to_ptr.vmem [resolvable:$true] %s1057_s26 }
   0xf   :  { %v138_v18 = vsel %vm131_vm2, %v129_v15, 0.0  ;;  %v135_v25 = vsel %vm131_vm2, %v128_v22, 0.0  ;;  %v141_v26 = vsel %vm131_vm2, %v130_v23, 0.0  ;;  %84 = vmatpush.msra.mxu0 %v40_v31  ;;  %s1068_s27 = sshll.u32 %s1272_s2, 4  ;;  %s1070_s30 = sshll.u32 %s1755_s3, 4  ;;  %s1069_s27 = int_to_ptr.vmem [resolvable:$true] %s1068_s27  ;;  %s1071_s30 = int_to_ptr.hbm [resolvable:$true] %s1070_s30 }
  0x10   :  { %139 = vadd.xlane.f32.xlu2 %v138_v18  ;;  %109 = vmatpush.msra.mxu1 %v32_v27 }
  0x11   :  { %1117 = vset.pattern.permute.xlu0 %v1265_v24  ;;  %85 = vmatpush.msra.mxu0 %v39_v32 }
  0x12   :  { %63 = vperm.xlu0 %1117, %v53_v5   ;;  %110 = vmatpush.msra.mxu1 %v31_v29 }
  0x13   :  { %86 = vmatpush.msra.mxu0 %v38_v33 }
  0x15   :  { %87 = vmatpush.msra.mxu0 %v37_v34 }
  0x16   :  { %136 = vadd.xlane.f32.xlu1 %v135_v25 }
  0x18   :  { %142 = vadd.xlane.f32.xlu2 %v141_v26 }
  0x30   :  { %180 = vrot.lane.b32.xlu2 %v179_v35, %s1266_s0 }
  0x7b   :  { %v58_v36 = vpop.permute.xlu0 %57 }
  0x7c   :  { %vm59_vm6 = vcmp.eq.s32.totalorder %v1298_v3, %v58_v36 }
  0x7d   :  { %v1085_v38 = vsel %vm59_vm6, 1.0, %v1267_v37  ;;  %vm200_vm6 = vcmp.eq.s32.totalorder %v1296_v2, 0 }
  0x7e   :  { %1088 = vmatmul.msk.f32.vlgmr.msra.gmra.mxu1 %vm68_vm5, %v1085_v38 }
  0x81   :  { %v134_v41 = vpop.xlane.xlu1 %133 }
  0x82   :  { %v144_v46 = vmul.f32 %v134_v41, %v1346_v43 }
  0x83   :  { %v140_v42 = vpop.xlane.xlu2 %139 }
  0x84   :  { %v64_v39 = vpop.permute.xlu0 %63  ;;  %v146_v49 = vmul.f32 %v140_v42, %v1352_v48 }
  0x85   :  { %vm65_vm7 = vcmp.eq.s32.totalorder %v1298_v3, %v64_v39 }
  0x86   :  { %v1086_v40 = vsel %vm65_vm7, 1.0, %v1267_v37  ;;  %vm282_vm7 = vcmp.eq.s32.totalorder %v1296_v2, 6 }
  0x87   :  { %1087 = vmatmul.msk.f32.vlgmr.msra.gmra.mxu0 %vm68_vm5, %v1086_v40  ;;  %vm1756_vm5 = vcmp.eq.s32.totalorder %v1296_v2, 7 }
  0x89   :  { %v137_v44 = vpop.xlane.xlu1 %136 }
  0x8a   :  { %v145_v47 = vmul.f32 %v137_v44, %v1348_v45 }
  0x8b   :  { %v143_v51 = vpop.xlane.xlu2 %142 }
  0x8c   :  { %v148_v50 = vadd.f32 %v145_v47, %v144_v46  ;;  %v147_v53 = vmul.f32 %v143_v51, %v1355_v52 }
  0x8e   :  { %v149_v54 = vadd.f32 %v148_v50, %v146_v49 }
  0x90   :  { %v150_v55 = vadd.f32 %v149_v54, %v147_v53 }
  0x92   :  { %v151_v56 = vrot.slane %v150_v55, 4 }
  0x93   :  { %v181_v26 = vpop.permute.xlu2 %180 }
  0x94   :  { %v152_v57 = vadd.f32 %v151_v56, %v150_v55 }
  0x96   :  { %v153_v58 = vrot.slane %v152_v57, 2 }
  0x98   :  { %v154_v59 = vadd.f32 %v153_v58, %v152_v57 }
  0x9a   :  { %v155_v60 = vrot.slane %v154_v59, 1 }
  0x9c   :  { %v156_v1 = vadd.f32 %v155_v60, %v154_v59 }
  0xfb   :  { %v112_v62 = vpop.f32.mrf.mxu1 }
 0x104   :  { %v89_v63 = vpop.f32.mrf.mxu0 }
 0x105   :  { %v113_v0 = vadd.f32 %v112_v62, %v89_v63 }
 0x107   :  { %v1359_v4 = vadd.f32 %v115_v61, %v113_v0 }
 0x109   :  { %v157_v5 = vadd.f32 %v156_v1, %v1359_v4 }
 0x10b   :  { %1118 = vtanh.f32 %v157_v5  ;;  %v1089_v10 = vmul.f32 -1.442695, %v157_v5 }
 0x10d   :  { %1120 = vpow2.f32 %v1089_v10 }
 0x111   :  { %v1119_v9 = vpop.eup %1118 }
 0x112   :  { %185 = vrot.lane.b32.xlu1 %v1119_v9, %s1266_s0 }
 0x113   :  { %v1121_v11 = vpop.eup %1120 }
 0x114   :  { %v161_v12 = vadd.f32 1.0, %v1121_v11 }
 0x116   :  { %1122 = vrcp.f32 %v161_v12  ;;  %v173_v17 = vand.u32 2147483648, %v161_v12  ;;  %vm167_vm9 = vweird.f32 %v161_v12  ;;  %v171_v18 = vand.u32 2147483647, %v161_v12 }
 0x118   :  { %v174_v22 = vor.u32 1.1754944e-38, %v173_v17  ;;  %vm172_vm11 = vcmp.eq.f32.partialorder %v171_v18, 8.507059e+37 }
 0x11c   :  { %v1123_v13 = vpop.eup %1122 }
 0x11d   :  { %v163_v14 = vmul.f32 %v1123_v13, %v161_v12  ;;  %vm168_vm8 = vweird.f32 %v1123_v13 }
 0x11e   :  { %vm169_vm10 = vmor %vm167_vm9, %vm168_vm8  ;;  %vm279_vm8 = vcmp.eq.s32.totalorder %v1296_v2, 1 }
 0x11f   :  { %v164_v6 = vsub.f32 1.0, %v163_v14 }
 0x121   :  { %v165_v15 = vmul.f32 %v1123_v13, %v164_v6 }
 0x123   :  { %v166_v16 = vadd.f32 %v1123_v13, %v165_v15 }
 0x125   :  { %v170_v21 = vsel %vm169_vm10, %v1123_v13, %v166_v16 }
 0x126   :  { %v175_v23 = vsel %vm172_vm11, %v174_v22, %v170_v21 }
 0x127   :  { %v183_v27 = vmul.f32 %v181_v26, %v175_v23 }
 0x184   :  { %v186_v24 = vpop.permute.xlu1 %185 }
 0x185   :  { %v188_v25 = vmul.f32 %v186_v24, %v175_v23 }
 0x187   :  { %190 = vrot.lane.b32.xlu0 %v188_v25, %s1266_s0 }
 0x1f9   :  { %v191_v28 = vpop.permute.xlu0 %190 }
 0x1fa   :  { %v1364_v29 = vadd.f32 %v191_v28, %v183_v27 }
 0x1fc   :  { %1124 = vtanh.f32 %v1364_v29  ;;  %v260_v24 = vrot.slane %v1364_v29, 7 }
 0x202   :  { %v1125_v30 = vpop.eup %1124 }
 0x203   :  { %196 = vrot.lane.b32.xlu0 %v1125_v30, %s1266_s0 }
 0x275   :  { %v197_v31 = vpop.permute.xlu0 %196 }
 0x276   :  { %v199_v32 = vmul.f32 %v197_v31, %v175_v23 }
 0x278   :  { %v1368_v33 = vperm.slane %v199_v32, 0 }
 0x27a   :  { %206 = vrot.lane.b32.xlu0 %v1368_v33, %s1268_s20  ;;  %v204_v32 = vsel %vm1756_vm5, %v1368_v33, 0.0 }
 0x2ec   :  { %v207_v34 = vpop.permute.xlu0 %206 }
 0x2ed   :  { %v211_v35 = vsel %vm1313_vm1, %v207_v34, 0.0  ;;  %v210_v36 = vsel %vm1327_vm3, %v207_v34, 0.0  ;;  %v209_v37 = vsel %vm1308_vm0, %v207_v34, 0.0  ;;  %v212_v41 = vsel %vm1332_vm4, %v207_v34, 0.0 }
 0x2ee   :  { %v219_v38 = vsel %vm131_vm2, %v211_v35, 0.0  ;;  %v216_v39 = vsel %vm131_vm2, %v210_v36, 0.0  ;;  %v213_v40 = vsel %vm131_vm2, %v209_v37, 0.0  ;;  %v222_v42 = vsel %vm131_vm2, %v212_v41, 0.0 }
 0x2ef   :  { %220 = vadd.xlane.f32.xlu0 %v219_v38  ;;  %217 = vadd.xlane.f32.xlu1 %v216_v39  ;;  %v202_v34 = vsel %vm200_vm6, %v1368_v33, 0.0 }
 0x2f0   :  { %214 = vadd.xlane.f32.xlu2 %v213_v40 }
 0x2f8   :  { %223 = vadd.xlane.f32.xlu2 %v222_v42 }
 0x362   :  { %v218_v44 = vpop.xlane.xlu1 %217  ;;  %v221_v50 = vpop.xlane.xlu0 %220 }
 0x363   :  { %v215_v46 = vpop.xlane.xlu2 %214  ;;  %v226_v47 = vmul.f32 %v218_v44, %v1348_v45  ;;  %v227_v53 = vmul.f32 %v221_v50, %v1352_v48 }
 0x364   :  { %v225_v49 = vmul.f32 %v215_v46, %v1346_v43 }
 0x366   :  { %v229_v51 = vadd.f32 %v226_v47, %v225_v49 }
 0x368   :  { %v230_v55 = vadd.f32 %v229_v51, %v227_v53 }
 0x36b   :  { %v224_v54 = vpop.xlane.xlu2 %223 }
 0x36c   :  { %v228_v56 = vmul.f32 %v224_v54, %v1355_v52 }
 0x36e   :  { %v231_v57 = vadd.f32 %v230_v55, %v228_v56 }
 0x370   :  { %v232_v58 = vrot.slane %v231_v57, 4 }
 0x372   :  { %v233_v59 = vadd.f32 %v232_v58, %v231_v57 }
 0x374   :  { %v234_v60 = vrot.slane %v233_v59, 2 }
 0x376   :  { %v235_v61 = vadd.f32 %v234_v60, %v233_v59 }
 0x378   :  { %v236_v62 = vrot.slane %v235_v61, 1 }
 0x37a   :  { %v237_v63 = vadd.f32 %v236_v62, %v235_v61 }
 0x37c   :  { %v238_v0 = vadd.f32 %v237_v63, %v1359_v4 }
 0x37e   :  { %1126 = vtanh.f32 %v238_v0  ;;  %v1090_v5 = vmul.f32 -1.442695, %v238_v0 }
 0x380   :  { %1128 = vpow2.f32 %v1090_v5 }
 0x384   :  { %v1127_v1 = vpop.eup %1126 }
 0x385   :  { %264 = vrot.lane.b32.xlu1 %v1127_v1, %s1266_s0 }
 0x386   :  { %v1129_v9 = vpop.eup %1128 }
 0x387   :  { %v242_v10 = vadd.f32 1.0, %v1129_v9 }
 0x389   :  { %1130 = vrcp.f32 %v242_v10  ;;  %v254_v15 = vand.u32 2147483648, %v242_v10  ;;  %vm248_vm13 = vweird.f32 %v242_v10  ;;  %v252_v16 = vand.u32 2147483647, %v242_v10 }
 0x38b   :  { %v255_v18 = vor.u32 1.1754944e-38, %v254_v15  ;;  %vm253_vm15 = vcmp.eq.f32.partialorder %v252_v16, 8.507059e+37 }
 0x38f   :  { %v1131_v11 = vpop.eup %1130 }
 0x390   :  { %v244_v12 = vmul.f32 %v1131_v11, %v242_v10  ;;  %vm249_vm12 = vweird.f32 %v1131_v11 }
 0x391   :  { %vm250_vm14 = vmor %vm248_vm13, %vm249_vm12  ;;  %vm361_vm13 = vcmp.eq.s32.totalorder %v1296_v2, 5 }
 0x392   :  { %v245_v13 = vsub.f32 1.0, %v244_v12 }
 0x394   :  { %v246_v14 = vmul.f32 %v1131_v11, %v245_v13 }
 0x396   :  { %v247_v6 = vadd.f32 %v1131_v11, %v246_v14 }
 0x398   :  { %v251_v17 = vsel %vm250_vm14, %v1131_v11, %v247_v6  ;;  %vm358_vm14 = vcmp.eq.s32.totalorder %v1296_v2, 2 }
 0x399   :  { %v256_v22 = vsel %vm253_vm15, %v255_v18, %v251_v17 }
 0x39a   :  { %v262_v25 = vmul.f32 %v260_v24, %v256_v22 }
 0x3f7   :  { %v265_v21 = vpop.permute.xlu1 %264 }
 0x3f8   :  { %v267_v23 = vmul.f32 %v265_v21, %v256_v22 }
 0x3fa   :  { %269 = vrot.lane.b32.xlu2 %v267_v23, %s1266_s0 }
 0x454   :  { %v270_v26 = vpop.permute.xlu2 %269 }
 0x455   :  { %v1392_v27 = vadd.f32 %v270_v26, %v262_v25 }
 0x457   :  { %1132 = vtanh.f32 %v1392_v27  ;;  %v339_v26 = vrot.slane %v1392_v27, 7 }
 0x45d   :  { %v1133_v28 = vpop.eup %1132 }
 0x45e   :  { %275 = vrot.lane.b32.xlu0 %v1133_v28, %s1266_s0 }
 0x4d0   :  { %v276_v30 = vpop.permute.xlu0 %275 }
 0x4d1   :  { %v278_v31 = vmul.f32 %v276_v30, %v256_v22 }
 0x4d3   :  { %v280_v29 = vperm.slane %v278_v31, 1 }
 0x4d5   :  { %v1408_v35 = vsel %vm282_vm7, %v280_v29, %v204_v32  ;;  %285 = vrot.lane.b32.xlu1 %v280_v29, %s1268_s20  ;;  %v1413_v36 = vsel %vm279_vm8, %v280_v29, %v202_v34 }
 0x547   :  { %v286_v37 = vpop.permute.xlu1 %285 }
 0x548   :  { %v290_v38 = vsel %vm1313_vm1, %v286_v37, 0.0  ;;  %v289_v39 = vsel %vm1327_vm3, %v286_v37, 0.0  ;;  %v288_v33 = vsel %vm1308_vm0, %v286_v37, 0.0  ;;  %v291_v44 = vsel %vm1332_vm4, %v286_v37, 0.0 }
 0x549   :  { %v298_v40 = vsel %vm131_vm2, %v290_v38, 0.0  ;;  %v295_v41 = vsel %vm131_vm2, %v289_v39, 0.0  ;;  %v292_v42 = vsel %vm131_vm2, %v288_v33, 0.0  ;;  %v301_v46 = vsel %vm131_vm2, %v291_v44, 0.0 }
 0x54a   :  { %299 = vadd.xlane.f32.xlu1 %v298_v40  ;;  %296 = vadd.xlane.f32.xlu2 %v295_v41 }
 0x54b   :  { %293 = vadd.xlane.f32.xlu0 %v292_v42 }
 0x553   :  { %302 = vadd.xlane.f32.xlu0 %v301_v46 }
 0x5bd   :  { %v297_v47 = vpop.xlane.xlu2 %296  ;;  %v300_v53 = vpop.xlane.xlu1 %299 }
 0x5be   :  { %v294_v49 = vpop.xlane.xlu0 %293  ;;  %v305_v50 = vmul.f32 %v297_v47, %v1348_v45  ;;  %v306_v55 = vmul.f32 %v300_v53, %v1352_v48 }
 0x5bf   :  { %v304_v51 = vmul.f32 %v294_v49, %v1346_v43 }
 0x5c1   :  { %v308_v54 = vadd.f32 %v305_v50, %v304_v51 }
 0x5c3   :  { %v309_v57 = vadd.f32 %v308_v54, %v306_v55 }
 0x5c6   :  { %v303_v56 = vpop.xlane.xlu0 %302 }
 0x5c7   :  { %v307_v58 = vmul.f32 %v303_v56, %v1355_v52 }
 0x5c9   :  { %v310_v59 = vadd.f32 %v309_v57, %v307_v58 }
 0x5cb   :  { %v311_v60 = vrot.slane %v310_v59, 4 }
 0x5cd   :  { %v312_v61 = vadd.f32 %v311_v60, %v310_v59 }
 0x5cf   :  { %v313_v62 = vrot.slane %v312_v61, 2 }
 0x5d1   :  { %v314_v63 = vadd.f32 %v313_v62, %v312_v61 }
 0x5d3   :  { %v315_v0 = vrot.slane %v314_v63, 1 }
 0x5d5   :  { %v316_v1 = vadd.f32 %v315_v0, %v314_v63 }
 0x5d7   :  { %v317_v5 = vadd.f32 %v316_v1, %v1359_v4 }
 0x5d9   :  { %1134 = vtanh.f32 %v317_v5  ;;  %v1091_v10 = vmul.f32 -1.442695, %v317_v5 }
 0x5db   :  { %1136 = vpow2.f32 %v1091_v10 }
 0x5df   :  { %v1135_v9 = vpop.eup %1134 }
 0x5e0   :  { %343 = vrot.lane.b32.xlu2 %v1135_v9, %s1266_s0 }
 0x5e1   :  { %v1137_v11 = vpop.eup %1136 }
 0x5e2   :  { %v321_v12 = vadd.f32 1.0, %v1137_v11 }
 0x5e4   :  { %1138 = vrcp.f32 %v321_v12  ;;  %v333_v17 = vand.u32 2147483648, %v321_v12  ;;  %vm327_vm10 = vweird.f32 %v321_v12  ;;  %v331_v18 = vand.u32 2147483647, %v321_v12 }
 0x5e6   :  { %v334_v22 = vor.u32 1.1754944e-38, %v333_v17  ;;  %vm332_vm12 = vcmp.eq.f32.partialorder %v331_v18, 8.507059e+37 }
 0x5ea   :  { %v1139_v13 = vpop.eup %1138 }
 0x5eb   :  { %v323_v14 = vmul.f32 %v1139_v13, %v321_v12  ;;  %vm328_vm9 = vweird.f32 %v1139_v13 }
 0x5ec   :  { %vm329_vm11 = vmor %vm327_vm10, %vm328_vm9 }
 0x5ed   :  { %v324_v6 = vsub.f32 1.0, %v323_v14 }
 0x5ef   :  { %v325_v15 = vmul.f32 %v1139_v13, %v324_v6 }
 0x5f1   :  { %v326_v16 = vadd.f32 %v1139_v13, %v325_v15 }
 0x5f3   :  { %v330_v21 = vsel %vm329_vm11, %v1139_v13, %v326_v16 }
 0x5f4   :  { %v335_v24 = vsel %vm332_vm12, %v334_v22, %v330_v21  ;;  %vm440_vm12 = vcmp.eq.s32.totalorder %v1296_v2, 4 }
 0x5f5   :  { %v341_v28 = vmul.f32 %v339_v26, %v335_v24 }
 0x63a   :  { %v344_v23 = vpop.permute.xlu2 %343 }
 0x63b   :  { %v346_v25 = vmul.f32 %v344_v23, %v335_v24 }
 0x63d   :  { %348 = vrot.lane.b32.xlu1 %v346_v25, %s1266_s0 }
 0x6af   :  { %v349_v30 = vpop.permute.xlu1 %348 }
 0x6b0   :  { %v1435_v31 = vadd.f32 %v349_v30, %v341_v28 }
 0x6b2   :  { %1140 = vtanh.f32 %v1435_v31  ;;  %v418_v26 = vrot.slane %v1435_v31, 7 }
 0x6b8   :  { %v1141_v29 = vpop.eup %1140 }
 0x6b9   :  { %354 = vrot.lane.b32.xlu0 %v1141_v29, %s1266_s0 }
 0x72b   :  { %v355_v32 = vpop.permute.xlu0 %354 }
 0x72c   :  { %v357_v34 = vmul.f32 %v355_v32, %v335_v24 }
 0x72e   :  { %v359_v37 = vperm.slane %v357_v34, 2 }
 0x730   :  { %v1444_v27 = vsel %vm361_vm13, %v359_v37, %v1408_v35  ;;  %364 = vrot.lane.b32.xlu2 %v359_v37, %s1268_s20  ;;  %v1450_v38 = vsel %vm358_vm14, %v359_v37, %v1413_v36 }
 0x78a   :  { %v365_v39 = vpop.permute.xlu2 %364 }
 0x78b   :  { %v369_v33 = vsel %vm1313_vm1, %v365_v39, 0.0  ;;  %v368_v40 = vsel %vm1327_vm3, %v365_v39, 0.0  ;;  %v367_v41 = vsel %vm1308_vm0, %v365_v39, 0.0  ;;  %v370_v36 = vsel %vm1332_vm4, %v365_v39, 0.0 }
 0x78c   :  { %v377_v35 = vsel %vm131_vm2, %v369_v33, 0.0  ;;  %v374_v42 = vsel %vm131_vm2, %v368_v40, 0.0  ;;  %v371_v44 = vsel %vm131_vm2, %v367_v41, 0.0  ;;  %v380_v46 = vsel %vm131_vm2, %v370_v36, 0.0 }
 0x78d   :  { %378 = vadd.xlane.f32.xlu2 %v377_v35  ;;  %375 = vadd.xlane.f32.xlu1 %v374_v42 }
 0x78e   :  { %372 = vadd.xlane.f32.xlu0 %v371_v44 }
 0x796   :  { %381 = vadd.xlane.f32.xlu0 %v380_v46 }
 0x800   :  { %v376_v47 = vpop.xlane.xlu1 %375  ;;  %v379_v53 = vpop.xlane.xlu2 %378 }
 0x801   :  { %v373_v49 = vpop.xlane.xlu0 %372  ;;  %v384_v50 = vmul.f32 %v376_v47, %v1348_v45  ;;  %v385_v55 = vmul.f32 %v379_v53, %v1352_v48 }
 0x802   :  { %v383_v51 = vmul.f32 %v373_v49, %v1346_v43 }
 0x804   :  { %v387_v54 = vadd.f32 %v384_v50, %v383_v51 }
 0x806   :  { %v388_v57 = vadd.f32 %v387_v54, %v385_v55 }
 0x809   :  { %v382_v56 = vpop.xlane.xlu0 %381 }
 0x80a   :  { %v386_v58 = vmul.f32 %v382_v56, %v1355_v52 }
 0x80c   :  { %v389_v59 = vadd.f32 %v388_v57, %v386_v58 }
 0x80e   :  { %v390_v60 = vrot.slane %v389_v59, 4 }
 0x810   :  { %v391_v61 = vadd.f32 %v390_v60, %v389_v59 }
 0x812   :  { %v392_v62 = vrot.slane %v391_v61, 2 }
 0x814   :  { %v393_v63 = vadd.f32 %v392_v62, %v391_v61 }
 0x816   :  { %v394_v0 = vrot.slane %v393_v63, 1 }
 0x818   :  { %v395_v1 = vadd.f32 %v394_v0, %v393_v63 }
 0x81a   :  { %v396_v5 = vadd.f32 %v395_v1, %v1359_v4 }
 0x81c   :  { %1142 = vtanh.f32 %v396_v5  ;;  %v1092_v10 = vmul.f32 -1.442695, %v396_v5 }
 0x81e   :  { %1144 = vpow2.f32 %v1092_v10 }
 0x822   :  { %v1143_v9 = vpop.eup %1142 }
 0x823   :  { %422 = vrot.lane.b32.xlu1 %v1143_v9, %s1266_s0 }
 0x824   :  { %v1145_v11 = vpop.eup %1144 }
 0x825   :  { %v400_v12 = vadd.f32 1.0, %v1145_v11 }
 0x827   :  { %1146 = vrcp.f32 %v400_v12  ;;  %v412_v17 = vand.u32 2147483648, %v400_v12  ;;  %vm406_vm9 = vweird.f32 %v400_v12  ;;  %v410_v18 = vand.u32 2147483647, %v400_v12 }
 0x829   :  { %v413_v22 = vor.u32 1.1754944e-38, %v412_v17  ;;  %vm411_vm11 = vcmp.eq.f32.partialorder %v410_v18, 8.507059e+37 }
 0x82d   :  { %v1147_v13 = vpop.eup %1146 }
 0x82e   :  { %v402_v14 = vmul.f32 %v1147_v13, %v400_v12  ;;  %vm407_vm15 = vweird.f32 %v1147_v13 }
 0x82f   :  { %vm408_vm10 = vmor %vm406_vm9, %vm407_vm15  ;;  %vm437_vm15 = vcmp.eq.s32.totalorder %v1296_v2, 3 }
 0x830   :  { %v403_v6 = vsub.f32 1.0, %v402_v14 }
 0x832   :  { %v404_v15 = vmul.f32 %v1147_v13, %v403_v6 }
 0x834   :  { %v405_v16 = vadd.f32 %v1147_v13, %v404_v15 }
 0x836   :  { %v409_v21 = vsel %vm408_vm10, %v1147_v13, %v405_v16 }
 0x837   :  { %v414_v24 = vsel %vm411_vm11, %v413_v22, %v409_v21 }
 0x838   :  { %v420_v28 = vmul.f32 %v418_v26, %v414_v24 }
 0x895   :  { %v423_v23 = vpop.permute.xlu1 %422 }
 0x896   :  { %v425_v25 = vmul.f32 %v423_v23, %v414_v24 }
 0x898   :  { %427 = vrot.lane.b32.xlu2 %v425_v25, %s1266_s0 }
 0x8f2   :  { %v428_v30 = vpop.permute.xlu2 %427 }
 0x8f3   :  { %v1472_v29 = vadd.f32 %v428_v30, %v420_v28 }
 0x8f5   :  { %1148 = vtanh.f32 %v1472_v29  ;;  %v497_v26 = vrot.slane %v1472_v29, 7 }
 0x8fb   :  { %v1149_v32 = vpop.eup %1148 }
 0x8fc   :  { %433 = vrot.lane.b32.xlu0 %v1149_v32, %s1266_s0 }
 0x96e   :  { %v434_v34 = vpop.permute.xlu0 %433 }
 0x96f   :  { %v436_v37 = vmul.f32 %v434_v34, %v414_v24 }
 0x971   :  { %v438_v39 = vperm.slane %v436_v37, 3 }
 0x973   :  { %v1481_v31 = vsel %vm440_vm12, %v438_v39, %v1444_v27  ;;  %443 = vrot.lane.b32.xlu0 %v438_v39, %s1268_s20  ;;  %v1487_v33 = vsel %vm437_vm15, %v438_v39, %v1450_v38 }
 0x9e5   :  { %v444_v40 = vpop.permute.xlu0 %443 }
 0x9e6   :  { %v448_v41 = vsel %vm1313_vm1, %v444_v40, 0.0  ;;  %v447_v35 = vsel %vm1327_vm3, %v444_v40, 0.0  ;;  %v446_v42 = vsel %vm1308_vm0, %v444_v40, 0.0  ;;  %v449_v38 = vsel %vm1332_vm4, %v444_v40, 0.0 }
 0x9e7   :  { %v456_v27 = vsel %vm131_vm2, %v448_v41, 0.0  ;;  %v453_v44 = vsel %vm131_vm2, %v447_v35, 0.0  ;;  %v450_v36 = vsel %vm131_vm2, %v446_v42, 0.0  ;;  %v459_v46 = vsel %vm131_vm2, %v449_v38, 0.0 }
 0x9e8   :  { %457 = vadd.xlane.f32.xlu0 %v456_v27  ;;  %454 = vadd.xlane.f32.xlu2 %v453_v44 }
 0x9e9   :  { %451 = vadd.xlane.f32.xlu1 %v450_v36 }
 0x9f1   :  { %460 = vadd.xlane.f32.xlu1 %v459_v46 }
 0xa5b   :  { %v455_v47 = vpop.xlane.xlu2 %454  ;;  %v458_v53 = vpop.xlane.xlu0 %457 }
 0xa5c   :  { %v452_v49 = vpop.xlane.xlu1 %451  ;;  %v463_v50 = vmul.f32 %v455_v47, %v1348_v45  ;;  %v464_v55 = vmul.f32 %v458_v53, %v1352_v48 }
 0xa5d   :  { %v462_v51 = vmul.f32 %v452_v49, %v1346_v43 }
 0xa5f   :  { %v466_v54 = vadd.f32 %v463_v50, %v462_v51 }
 0xa61   :  { %v467_v57 = vadd.f32 %v466_v54, %v464_v55 }
 0xa64   :  { %v461_v56 = vpop.xlane.xlu1 %460 }
 0xa65   :  { %v465_v58 = vmul.f32 %v461_v56, %v1355_v52 }
 0xa67   :  { %v468_v59 = vadd.f32 %v467_v57, %v465_v58 }
 0xa69   :  { %v469_v60 = vrot.slane %v468_v59, 4 }
 0xa6b   :  { %v470_v61 = vadd.f32 %v469_v60, %v468_v59 }
 0xa6d   :  { %v471_v62 = vrot.slane %v470_v61, 2 }
 0xa6f   :  { %v472_v63 = vadd.f32 %v471_v62, %v470_v61 }
 0xa71   :  { %v473_v0 = vrot.slane %v472_v63, 1 }
 0xa73   :  { %v474_v1 = vadd.f32 %v473_v0, %v472_v63 }
 0xa75   :  { %v475_v5 = vadd.f32 %v474_v1, %v1359_v4 }
 0xa77   :  { %1150 = vtanh.f32 %v475_v5  ;;  %v1093_v10 = vmul.f32 -1.442695, %v475_v5 }
 0xa79   :  { %1152 = vpow2.f32 %v1093_v10 }
 0xa7d   :  { %v1151_v9 = vpop.eup %1150 }
 0xa7e   :  { %501 = vrot.lane.b32.xlu2 %v1151_v9, %s1266_s0 }
 0xa7f   :  { %v1153_v11 = vpop.eup %1152 }
 0xa80   :  { %v479_v12 = vadd.f32 1.0, %v1153_v11 }
 0xa82   :  { %1154 = vrcp.f32 %v479_v12  ;;  %v491_v17 = vand.u32 2147483648, %v479_v12  ;;  %vm485_vm10 = vweird.f32 %v479_v12  ;;  %v489_v18 = vand.u32 2147483647, %v479_v12 }
 0xa84   :  { %v492_v22 = vor.u32 1.1754944e-38, %v491_v17  ;;  %vm490_vm5 = vcmp.eq.f32.partialorder %v489_v18, 8.507059e+37 }
 0xa88   :  { %v1155_v13 = vpop.eup %1154 }
 0xa89   :  { %v481_v14 = vmul.f32 %v1155_v13, %v479_v12  ;;  %vm486_vm9 = vweird.f32 %v1155_v13 }
 0xa8a   :  { %vm487_vm11 = vmor %vm485_vm10, %vm486_vm9 }
 0xa8b   :  { %v482_v6 = vsub.f32 1.0, %v481_v14 }
 0xa8d   :  { %v483_v15 = vmul.f32 %v1155_v13, %v482_v6 }
 0xa8f   :  { %v484_v16 = vadd.f32 %v1155_v13, %v483_v15 }
 0xa91   :  { %v488_v21 = vsel %vm487_vm11, %v1155_v13, %v484_v16 }
 0xa92   :  { %v493_v24 = vsel %vm490_vm5, %v492_v22, %v488_v21 }
 0xa93   :  { %v499_v28 = vmul.f32 %v497_v26, %v493_v24 }
 0xad8   :  { %v502_v23 = vpop.permute.xlu2 %501 }
 0xad9   :  { %v504_v25 = vmul.f32 %v502_v23, %v493_v24 }
 0xadb   :  { %506 = vrot.lane.b32.xlu0 %v504_v25, %s1266_s0 }
 0xb4d   :  { %v507_v30 = vpop.permute.xlu0 %506 }
 0xb4e   :  { %v1509_v32 = vadd.f32 %v507_v30, %v499_v28 }
 0xb50   :  { %1156 = vtanh.f32 %v1509_v32  ;;  %v574_v26 = vrot.slane %v1509_v32, 7 }
 0xb56   :  { %v1157_v34 = vpop.eup %1156 }
 0xb57   :  { %512 = vrot.lane.b32.xlu1 %v1157_v34, %s1266_s0 }
 0xbc9   :  { %v513_v37 = vpop.permute.xlu1 %512 }
 0xbca   :  { %v515_v39 = vmul.f32 %v513_v37, %v493_v24 }
 0xbcc   :  { %v516_v40 = vperm.slane %v515_v39, 4 }
 0xbce   :  { %v1516_v41 = vsel %vm437_vm15, %v516_v40, %v1481_v31  ;;  %520 = vrot.lane.b32.xlu2 %v516_v40, %s1268_s20  ;;  %v1522_v29 = vsel %vm440_vm12, %v516_v40, %v1487_v33 }
 0xc28   :  { %v521_v35 = vpop.permute.xlu2 %520 }
 0xc29   :  { %v525_v42 = vsel %vm1313_vm1, %v521_v35, 0.0  ;;  %v524_v27 = vsel %vm1327_vm3, %v521_v35, 0.0  ;;  %v523_v44 = vsel %vm1308_vm0, %v521_v35, 0.0  ;;  %v526_v33 = vsel %vm1332_vm4, %v521_v35, 0.0 }
 0xc2a   :  { %v533_v31 = vsel %vm131_vm2, %v525_v42, 0.0  ;;  %v530_v36 = vsel %vm131_vm2, %v524_v27, 0.0  ;;  %v527_v38 = vsel %vm131_vm2, %v523_v44, 0.0  ;;  %v536_v46 = vsel %vm131_vm2, %v526_v33, 0.0 }
 0xc2b   :  { %534 = vadd.xlane.f32.xlu1 %v533_v31  ;;  %531 = vadd.xlane.f32.xlu2 %v530_v36 }
 0xc2c   :  { %528 = vadd.xlane.f32.xlu0 %v527_v38 }
 0xc34   :  { %537 = vadd.xlane.f32.xlu0 %v536_v46 }
 0xc9e   :  { %v532_v47 = vpop.xlane.xlu2 %531  ;;  %v535_v53 = vpop.xlane.xlu1 %534 }
 0xc9f   :  { %v529_v49 = vpop.xlane.xlu0 %528  ;;  %v540_v50 = vmul.f32 %v532_v47, %v1348_v45  ;;  %v541_v55 = vmul.f32 %v535_v53, %v1352_v48 }
 0xca0   :  { %v539_v51 = vmul.f32 %v529_v49, %v1346_v43 }
 0xca2   :  { %v543_v54 = vadd.f32 %v540_v50, %v539_v51 }
 0xca4   :  { %v544_v57 = vadd.f32 %v543_v54, %v541_v55 }
 0xca7   :  { %v538_v56 = vpop.xlane.xlu0 %537 }
 0xca8   :  { %v542_v58 = vmul.f32 %v538_v56, %v1355_v52 }
 0xcaa   :  { %v545_v59 = vadd.f32 %v544_v57, %v542_v58 }
 0xcac   :  { %v546_v60 = vrot.slane %v545_v59, 4 }
 0xcae   :  { %v547_v61 = vadd.f32 %v546_v60, %v545_v59 }
 0xcb0   :  { %v548_v62 = vrot.slane %v547_v61, 2 }
 0xcb2   :  { %v549_v63 = vadd.f32 %v548_v62, %v547_v61 }
 0xcb4   :  { %v550_v0 = vrot.slane %v549_v63, 1 }
 0xcb6   :  { %v551_v1 = vadd.f32 %v550_v0, %v549_v63 }
 0xcb8   :  { %v552_v5 = vadd.f32 %v551_v1, %v1359_v4 }
 0xcba   :  { %1158 = vtanh.f32 %v552_v5  ;;  %v1094_v10 = vmul.f32 -1.442695, %v552_v5 }
 0xcbc   :  { %1160 = vpow2.f32 %v1094_v10 }
 0xcc0   :  { %v1159_v9 = vpop.eup %1158 }
 0xcc1   :  { %578 = vrot.lane.b32.xlu2 %v1159_v9, %s1266_s0 }
 0xcc2   :  { %v1161_v11 = vpop.eup %1160 }
 0xcc3   :  { %v556_v12 = vadd.f32 1.0, %v1161_v11 }
 0xcc5   :  { %1162 = vrcp.f32 %v556_v12  ;;  %v568_v17 = vand.u32 2147483648, %v556_v12  ;;  %vm562_vm12 = vweird.f32 %v556_v12  ;;  %v566_v18 = vand.u32 2147483647, %v556_v12 }
 0xcc7   :  { %v569_v22 = vor.u32 1.1754944e-38, %v568_v17  ;;  %vm567_vm9 = vcmp.eq.f32.partialorder %v566_v18, 8.507059e+37 }
 0xccb   :  { %v1163_v13 = vpop.eup %1162 }
 0xccc   :  { %v558_v14 = vmul.f32 %v1163_v13, %v556_v12  ;;  %vm563_vm5 = vweird.f32 %v1163_v13 }
 0xccd   :  { %vm564_vm15 = vmor %vm562_vm12, %vm563_vm5  ;;  %vm753_vm5 = vcmask 130048  }
 0xcce   :  { %v559_v6 = vsub.f32 1.0, %v558_v14 }
 0xcd0   :  { %v560_v15 = vmul.f32 %v1163_v13, %v559_v6 }
 0xcd2   :  { %v561_v16 = vadd.f32 %v1163_v13, %v560_v15 }
 0xcd4   :  { %v565_v21 = vsel %vm564_vm15, %v1163_v13, %v561_v16 }
 0xcd5   :  { %v570_v24 = vsel %vm567_vm9, %v569_v22, %v565_v21 }
 0xcd6   :  { %v576_v28 = vmul.f32 %v574_v26, %v570_v24 }
 0xd1b   :  { %v579_v23 = vpop.permute.xlu2 %578 }
 0xd1c   :  { %v581_v25 = vmul.f32 %v579_v23, %v570_v24 }
 0xd1e   :  { %583 = vrot.lane.b32.xlu1 %v581_v25, %s1266_s0 }
 0xd90   :  { %v584_v30 = vpop.permute.xlu1 %583 }
 0xd91   :  { %v1544_v34 = vadd.f32 %v584_v30, %v576_v28 }
 0xd93   :  { %1164 = vtanh.f32 %v1544_v34  ;;  %v651_v26 = vrot.slane %v1544_v34, 7 }
 0xd99   :  { %v1165_v37 = vpop.eup %1164 }
 0xd9a   :  { %589 = vrot.lane.b32.xlu0 %v1165_v37, %s1266_s0 }
 0xe0c   :  { %v590_v39 = vpop.permute.xlu0 %589 }
 0xe0d   :  { %v592_v40 = vmul.f32 %v590_v39, %v570_v24 }
 0xe0f   :  { %v593_v35 = vperm.slane %v592_v40, 5 }
 0xe11   :  { %v1551_v42 = vsel %vm358_vm14, %v593_v35, %v1516_v41  ;;  %597 = vrot.lane.b32.xlu2 %v593_v35, %s1268_s20  ;;  %v1557_v32 = vsel %vm361_vm13, %v593_v35, %v1522_v29 }
 0xe6b   :  { %v598_v27 = vpop.permute.xlu2 %597 }
 0xe6c   :  { %v602_v44 = vsel %vm1313_vm1, %v598_v27, 0.0  ;;  %v601_v31 = vsel %vm1327_vm3, %v598_v27, 0.0  ;;  %v600_v36 = vsel %vm1308_vm0, %v598_v27, 0.0  ;;  %v603_v29 = vsel %vm1332_vm4, %v598_v27, 0.0 }
 0xe6d   :  { %v610_v41 = vsel %vm131_vm2, %v602_v44, 0.0  ;;  %v607_v38 = vsel %vm131_vm2, %v601_v31, 0.0  ;;  %v604_v33 = vsel %vm131_vm2, %v600_v36, 0.0  ;;  %v613_v46 = vsel %vm131_vm2, %v603_v29, 0.0 }
 0xe6e   :  { %611 = vadd.xlane.f32.xlu2 %v610_v41  ;;  %608 = vadd.xlane.f32.xlu1 %v607_v38 }
 0xe6f   :  { %605 = vadd.xlane.f32.xlu0 %v604_v33 }
 0xe77   :  { %614 = vadd.xlane.f32.xlu0 %v613_v46 }
 0xee1   :  { %v609_v47 = vpop.xlane.xlu1 %608  ;;  %v612_v53 = vpop.xlane.xlu2 %611 }
 0xee2   :  { %v606_v49 = vpop.xlane.xlu0 %605  ;;  %v617_v50 = vmul.f32 %v609_v47, %v1348_v45  ;;  %v618_v55 = vmul.f32 %v612_v53, %v1352_v48 }
 0xee3   :  { %v616_v51 = vmul.f32 %v606_v49, %v1346_v43 }
 0xee5   :  { %v620_v54 = vadd.f32 %v617_v50, %v616_v51 }
 0xee7   :  { %v621_v57 = vadd.f32 %v620_v54, %v618_v55 }
 0xeea   :  { %v615_v56 = vpop.xlane.xlu0 %614 }
 0xeeb   :  { %v619_v58 = vmul.f32 %v615_v56, %v1355_v52 }
 0xeed   :  { %v622_v59 = vadd.f32 %v621_v57, %v619_v58 }
 0xeef   :  { %v623_v60 = vrot.slane %v622_v59, 4 }
 0xef1   :  { %v624_v61 = vadd.f32 %v623_v60, %v622_v59 }
 0xef3   :  { %v625_v62 = vrot.slane %v624_v61, 2 }
 0xef5   :  { %v626_v63 = vadd.f32 %v625_v62, %v624_v61 }
 0xef7   :  { %v627_v0 = vrot.slane %v626_v63, 1 }
 0xef9   :  { %v628_v1 = vadd.f32 %v627_v0, %v626_v63 }
 0xefb   :  { %v629_v5 = vadd.f32 %v628_v1, %v1359_v4 }
 0xefd   :  { %1166 = vtanh.f32 %v629_v5  ;;  %v1095_v10 = vmul.f32 -1.442695, %v629_v5 }
 0xeff   :  { %1168 = vpow2.f32 %v1095_v10 }
 0xf03   :  { %v1167_v9 = vpop.eup %1166 }
 0xf04   :  { %655 = vrot.lane.b32.xlu1 %v1167_v9, %s1266_s0 }
 0xf05   :  { %v1169_v11 = vpop.eup %1168 }
 0xf06   :  { %v633_v12 = vadd.f32 1.0, %v1169_v11 }
 0xf08   :  { %1170 = vrcp.f32 %v633_v12  ;;  %v645_v17 = vand.u32 2147483648, %v633_v12  ;;  %vm639_vm14 = vweird.f32 %v633_v12  ;;  %v643_v18 = vand.u32 2147483647, %v633_v12 }
 0xf0a   :  { %v646_v22 = vor.u32 1.1754944e-38, %v645_v17  ;;  %vm644_vm11 = vcmp.eq.f32.partialorder %v643_v18, 8.507059e+37 }
 0xf0e   :  { %v1171_v13 = vpop.eup %1170 }
 0xf0f   :  { %v635_v14 = vmul.f32 %v1171_v13, %v633_v12  ;;  %vm640_vm13 = vweird.f32 %v1171_v13 }
 0xf10   :  { %vm641_vm10 = vmor %vm639_vm14, %vm640_vm13 }
 0xf11   :  { %v636_v6 = vsub.f32 1.0, %v635_v14 }
 0xf13   :  { %v637_v15 = vmul.f32 %v1171_v13, %v636_v6 }
 0xf15   :  { %v638_v16 = vadd.f32 %v1171_v13, %v637_v15 }
 0xf17   :  { %v642_v21 = vsel %vm641_vm10, %v1171_v13, %v638_v16  ;;  %vm967_vm10 = vcmask 7175  }
 0xf18   :  { %v647_v24 = vsel %vm644_vm11, %v646_v22, %v642_v21 }
 0xf19   :  { %v653_v28 = vmul.f32 %v651_v26, %v647_v24 }
 0xf76   :  { %v656_v23 = vpop.permute.xlu1 %655 }
 0xf77   :  { %v658_v25 = vmul.f32 %v656_v23, %v647_v24  ;;  %v51_v23 = vld [vmem:[#allocation2 + $0xa0] sm:$0xff] }
 0xf78   :  { %770 = vmatpush.msra.mxu2 %v51_v23 }
 0xf79   :  { %660 = vrot.lane.b32.xlu2 %v658_v25, %s1266_s0 }
 0xfd3   :  { %v661_v30 = vpop.permute.xlu2 %660 }
 0xfd4   :  { %v1579_v37 = vadd.f32 %v661_v30, %v653_v28 }
 0xfd6   :  { %1172 = vtanh.f32 %v1579_v37  ;;  %v728_v16 = vrot.slane %v1579_v37, 7 }
 0xfdc   :  { %v1173_v39 = vpop.eup %1172 }
 0xfdd   :  { %666 = vrot.lane.b32.xlu0 %v1173_v39, %s1266_s0  ;;  %v49_v39 = vld [vmem:[#allocation2 + $0x90] sm:$0xff] }
 0xfde   :  { %795 = vmatpush.msra.mxu3 %v49_v39 }
0x104f   :  { %v667_v40 = vpop.permute.xlu0 %666 }
0x1050   :  { %v669_v35 = vmul.f32 %v667_v40, %v647_v24  ;;  %v50_v24 = vld [vmem:[#allocation2 + $0x98] sm:$0xff]  ;;  %v48_v40 = vld [vmem:[#allocation2 + $0x88] sm:$0xff] }
0x1051   :  { %771 = vmatpush.msra.mxu2 %v50_v24  ;;  %796 = vmatpush.msra.mxu3 %v48_v40 }
0x1052   :  { %v670_v27 = vperm.slane %v669_v35, 6  ;;  %v1623_v35 = vld [vmem:[#allocation2 + $0xa8] sm:$0xff] }
0x1054   :  { %674 = vrot.lane.b32.xlu1 %v670_v27, %s1268_s20  ;;  %v1587_v44 = vsel %vm279_vm8, %v670_v27, %v1551_v42  ;;  %v1592_v34 = vsel %vm282_vm7, %v670_v27, %v1557_v32  ;;  %vm1765_vm7 = vcmp.eq.s32.totalorder %v1296_v2, 7  ;;  %vm805_vm8 = vcmp.eq.s32.totalorder %v1298_v3, 4 }
0x1055   :  { %v1270_v27 = vmov -10000.0  }
0x10c6   :  { %v675_v31 = vpop.permute.xlu1 %674 }
0x10c7   :  { %v679_v36 = vsel %vm1313_vm1, %v675_v31, 0.0  ;;  %v678_v41 = vsel %vm1327_vm3, %v675_v31, 0.0  ;;  %v677_v38 = vsel %vm1308_vm0, %v675_v31, 0.0  ;;  %v680_v32 = vsel %vm1332_vm4, %v675_v31, 0.0 }
0x10c8   :  { %v687_v33 = vsel %vm131_vm2, %v679_v36, 0.0  ;;  %v684_v42 = vsel %vm131_vm2, %v678_v41, 0.0  ;;  %v681_v29 = vsel %vm131_vm2, %v677_v38, 0.0  ;;  %v690_v8 = vsel %vm131_vm2, %v680_v32, 0.0 }
0x10c9   :  { %688 = vadd.xlane.f32.xlu1 %v687_v33  ;;  %685 = vadd.xlane.f32.xlu2 %v684_v42 }
0x10ca   :  { %682 = vadd.xlane.f32.xlu0 %v681_v29 }
0x10d2   :  { %691 = vadd.xlane.f32.xlu0 %v690_v8 }
0x113c   :  { %v686_v19 = vpop.xlane.xlu2 %685  ;;  %v689_v50 = vpop.xlane.xlu1 %688 }
0x113d   :  { %v683_v46 = vpop.xlane.xlu0 %682  ;;  %v694_v47 = vmul.f32 %v686_v19, %v1348_v45  ;;  %v695_v53 = vmul.f32 %v689_v50, %v1352_v48 }
0x113e   :  { %v693_v49 = vmul.f32 %v683_v46, %v1346_v43 }
0x1140   :  { %v697_v51 = vadd.f32 %v694_v47, %v693_v49  ;;  %v1182_v47 = vld [vmem:[#allocation2 + $0x80] sm:$0xff] }
0x1141   :  { %v801_v49 = vperm.slane %v1182_v47, 3 }
0x1142   :  { %v698_v55 = vadd.f32 %v697_v51, %v695_v53 }
0x1145   :  { %v692_v54 = vpop.xlane.xlu0 %691 }
0x1146   :  { %v696_v56 = vmul.f32 %v692_v54, %v1355_v52 }
0x1148   :  { %v699_v57 = vadd.f32 %v698_v55, %v696_v56 }
0x114a   :  { %v700_v20 = vrot.slane %v699_v57, 4 }
0x114c   :  { %v701_v58 = vadd.f32 %v700_v20, %v699_v57 }
0x114e   :  { %v702_v59 = vrot.slane %v701_v58, 2 }
0x1150   :  { %v703_v60 = vadd.f32 %v702_v59, %v701_v58 }
0x1152   :  { %v704_v61 = vrot.slane %v703_v60, 1 }
0x1154   :  { %v705_v62 = vadd.f32 %v704_v61, %v703_v60 }
0x1156   :  { %v706_v63 = vadd.f32 %v705_v62, %v1359_v4 }
0x1158   :  { %1174 = vtanh.f32 %v706_v63  ;;  %v1096_v43 = vmul.f32 -1.442695, %v706_v63 }
0x115a   :  { %1176 = vpow2.f32 %v1096_v43 }
0x115e   :  { %v1175_v45 = vpop.eup %1174 }
0x115f   :  { %732 = vrot.lane.b32.xlu2 %v1175_v45, %s1266_s0 }
0x1160   :  { %v1177_v48 = vpop.eup %1176 }
0x1161   :  { %v710_v0 = vadd.f32 1.0, %v1177_v48 }
0x1163   :  { %1178 = vrcp.f32 %v710_v0  ;;  %v722_v11 = vand.u32 2147483648, %v710_v0  ;;  %vm716_vm2 = vweird.f32 %v710_v0  ;;  %v720_v12 = vand.u32 2147483647, %v710_v0 }
0x1165   :  { %v723_v13 = vor.u32 1.1754944e-38, %v722_v11  ;;  %vm721_vm4 = vcmp.eq.f32.partialorder %v720_v12, 8.507059e+37 }
0x1169   :  { %v1179_v1 = vpop.eup %1178 }
0x116a   :  { %v712_v52 = vmul.f32 %v1179_v1, %v710_v0  ;;  %vm717_vm1 = vweird.f32 %v1179_v1 }
0x116b   :  { %vm718_vm3 = vmor %vm716_vm2, %vm717_vm1 }
0x116c   :  { %v713_v5 = vsub.f32 1.0, %v712_v52 }
0x116e   :  { %v714_v9 = vmul.f32 %v1179_v1, %v713_v5 }
0x1170   :  { %v715_v10 = vadd.f32 %v1179_v1, %v714_v9 }
0x1172   :  { %v719_v4 = vsel %vm718_vm3, %v1179_v1, %v715_v10  ;;  %vm974_vm3 = vcmask 1045504  }
0x1173   :  { %v724_v6 = vsel %vm721_vm4, %v723_v13, %v719_v4 }
0x1174   :  { %v730_v17 = vmul.f32 %v728_v16, %v724_v6 }
0x11b9   :  { %v733_v14 = vpop.permute.xlu2 %732 }
0x11ba   :  { %v735_v15 = vmul.f32 %v733_v14, %v724_v6 }
0x11bc   :  { %737 = vrot.lane.b32.xlu1 %v735_v15, %s1266_s0 }
0x122e   :  { %v738_v18 = vpop.permute.xlu1 %737 }
0x122f   :  { %v740_v21 = vadd.f32 %v738_v18, %v730_v17 }
0x1231   :  { %1180 = vtanh.f32 %v740_v21 }
0x1237   :  { %v1181_v22 = vpop.eup %1180 }
0x1238   :  { %743 = vrot.lane.b32.xlu0 %v1181_v22, %s1266_s0 }
0x12aa   :  { %v744_v25 = vpop.permute.xlu0 %743 }
0x12ab   :  { %v746_v26 = vmul.f32 %v744_v25, %v724_v6 }
0x12ad   :  { %v747_v28 = vperm.slane %v746_v26, 7 }
0x12af   :  { %v749_v30 = vsel %vm200_vm6, %v747_v28, %v1587_v44  ;;  %v748_v37 = vsel %vm1765_vm7, %v747_v28, %v1592_v34  ;;  %v806_v44 = vsel %vm805_vm8, 0.0, %v1270_v27  ;;  %vm808_vm6 = vcmask 46080  }
0x12b0   :  { %751 = vrot.lane.b32.xlu2 %v749_v30, %s1269_s21  ;;  %777 = vrot.lane.b32.xlu0 %v748_v37, %s1268_s20  ;;  %v807_v31 = vadd.f32 %v806_v44, %v1623_v35  ;;  %vm969_vm7 = vcmp.eq.s32.totalorder %v1298_v3, 7 }
0x12b2   :  { %v809_v34 = vsel %vm808_vm6, %v807_v31, -inf }
0x12b3   :  { %810 = vmax.xlane.f32.xlu1 %v809_v34 }
0x130a   :  { %v752_v36 = vpop.permute.xlu2 %751 }
0x130b   :  { %1097 = vmatmul.msk.f32.vlgmr.msra.gmra.mxu2 %vm753_vm5, %v752_v36 }
0x1322   :  { %v778_v41 = vpop.permute.xlu0 %777 }
0x1323   :  { %1098 = vmatmul.msk.f32.vlgmr.msra.gmra.mxu3 %vm753_vm5, %v778_v41 }
0x1326   :  { %v811_v38 = vpop.xlane.xlu1 %810 }
0x1327   :  { %v812_v33 = vsel %vm1308_vm0, %v811_v38, 0.0 }
0x1328   :  { %v813_v42 = vsel %vm808_vm6, %v812_v33, 0.0 }
0x1329   :  { %v814_v29 = vrot.slane %v813_v42, 4 }
0x132b   :  { %v815_v32 = vadd.f32 %v814_v29, %v813_v42 }
0x132d   :  { %v816_v8 = vrot.slane %v815_v32, 2 }
0x132f   :  { %v817_v19 = vadd.f32 %v816_v8, %v815_v32 }
0x1331   :  { %v818_v46 = vrot.slane %v817_v19, 1 }
0x1333   :  { %v819_v54 = vadd.f32 %v818_v46, %v817_v19 }
0x138e   :  { %v773_v50 = vpop.f32.mrf.mxu2 }
0x13a6   :  { %v798_v51 = vpop.f32.mrf.mxu3 }
0x13a7   :  { %v799_v53 = vadd.f32 %v798_v51, %v773_v50 }
0x13a9   :  { %v1632_v55 = vadd.f32 %v801_v49, %v799_v53 }
0x13ab   :  { %v820_v56 = vadd.f32 %v819_v54, %v1632_v55 }
0x13ad   :  { %v821_v57 = vperm.slane %v820_v56, 0 }
0x13af   :  { %v1636_v20 = vadd.f32 %v821_v57, %v1623_v35 }
0x13b1   :  { %v823_v58 = vsel %vm808_vm6, %v1636_v20, -inf }
0x13b2   :  { %824 = vmax.xlane.f32.xlu2 %v823_v58 }
0x1425   :  { %v1640_v59 = vpop.xlane.xlu2 %824 }
0x1426   :  { %v831_v60 = vsel %vm1308_vm0, %v1640_v59, 0.0  ;;  %vm826_vm9 = vcmp.eq.f32.partialorder %v1636_v20, %v1640_v59 }
0x1427   :  { %v832_v61 = vsel %vm808_vm6, %v831_v60, 0.0 }
0x1428   :  { %v833_v62 = vrot.slane %v832_v61, 4 }
0x142a   :  { %v834_v63 = vadd.f32 %v833_v62, %v832_v61 }
0x142c   :  { %v835_v45 = vrot.slane %v834_v63, 2 }
0x142e   :  { %v836_v43 = vadd.f32 %v835_v45, %v834_v63 }
0x1430   :  { %v837_v48 = vrot.slane %v836_v43, 1 }
0x1432   :  { %v838_v0 = vadd.f32 %v837_v48, %v836_v43 }
0x1434   :  { %v839_v1 = vadd.f32 %v838_v0, %v1632_v55 }
0x1436   :  { %v840_v52 = vperm.slane %v839_v1, 1 }
0x1438   :  { %v1648_v5 = vadd.f32 %v840_v52, %v1623_v35 }
0x143a   :  { %v842_v9 = vsel %vm808_vm6, %v1648_v5, -inf }
0x143b   :  { %843 = vmax.xlane.f32.xlu0 %v842_v9 }
0x14ae   :  { %v1652_v10 = vpop.xlane.xlu0 %843 }
0x14af   :  { %v850_v11 = vsel %vm1308_vm0, %v1652_v10, 0.0  ;;  %vm845_vm2 = vcmp.eq.f32.partialorder %v1648_v5, %v1652_v10 }
0x14b0   :  { %v851_v12 = vsel %vm808_vm6, %v850_v11, 0.0 }
0x14b1   :  { %v852_v4 = vrot.slane %v851_v12, 4 }
0x14b3   :  { %v853_v13 = vadd.f32 %v852_v4, %v851_v12 }
0x14b5   :  { %v854_v14 = vrot.slane %v853_v13, 2 }
0x14b7   :  { %v855_v6 = vadd.f32 %v854_v14, %v853_v13 }
0x14b9   :  { %v856_v15 = vrot.slane %v855_v6, 1 }
0x14bb   :  { %v857_v16 = vadd.f32 %v856_v15, %v855_v6 }
0x14bd   :  { %v858_v17 = vadd.f32 %v857_v16, %v1632_v55 }
0x14bf   :  { %v859_v18 = vperm.slane %v858_v17, 2 }
0x14c1   :  { %v1660_v21 = vadd.f32 %v859_v18, %v1623_v35 }
0x14c3   :  { %v861_v22 = vsel %vm808_vm6, %v1660_v21, -inf }
0x14c4   :  { %862 = vmax.xlane.f32.xlu1 %v861_v22  ;;  %v803_v22 = vcvt.s32.f32 %v1298_v3 }
0x1537   :  { %v1664_v23 = vpop.xlane.xlu1 %862 }
0x1538   :  { %v869_v24 = vsel %vm1308_vm0, %v1664_v23, 0.0  ;;  %vm864_vm14 = vcmp.eq.f32.partialorder %v1660_v21, %v1664_v23  ;;  %v846_v21 = vsel %vm845_vm2, %v803_v22, 6.0  ;;  %vm1047_vm2 = vcmp.eq.s32.totalorder %v1298_v3, 0 }
0x1539   :  { %v870_v25 = vsel %vm808_vm6, %v869_v24, 0.0  ;;  %v847_v23 = vsel %vm808_vm6, %v846_v21, inf }
0x153a   :  { %v871_v26 = vrot.slane %v870_v25, 4 }
0x153c   :  { %v872_v28 = vadd.f32 %v871_v26, %v870_v25 }
0x153e   :  { %v873_v30 = vrot.slane %v872_v28, 2 }
0x1540   :  { %v874_v37 = vadd.f32 %v873_v30, %v872_v28 }
0x1542   :  { %v875_v39 = vrot.slane %v874_v37, 1 }
0x1544   :  { %v876_v40 = vadd.f32 %v875_v39, %v874_v37 }
0x1546   :  { %v877_v27 = vadd.f32 %v876_v40, %v1632_v55 }
0x1548   :  { %v878_v44 = vperm.slane %v877_v27, 3 }
0x154a   :  { %v879_v31 = vadd.f32 %v878_v44, %v1623_v35 }
0x154c   :  { %v880_v34 = vsel %vm808_vm6, %v879_v31, -inf }
0x154d   :  { %881 = vmax.xlane.f32.xlu2 %v880_v34 }
0x15c0   :  { %v882_v36 = vpop.xlane.xlu2 %881 }
0x15c1   :  { %v888_v41 = vsel %vm1308_vm0, %v882_v36, 0.0  ;;  %vm883_vm15 = vcmp.eq.f32.partialorder %v879_v31, %v882_v36 }
0x15c2   :  { %v889_v38 = vsel %vm808_vm6, %v888_v41, 0.0  ;;  %v884_v40 = vsel %vm883_vm15, %v803_v22, 6.0  ;;  %v955_v41 = vrot.slane %v1623_v35, 6 }
0x15c3   :  { %v890_v33 = vrot.slane %v889_v38, 4  ;;  %v885_v34 = vsel %vm808_vm6, %v884_v40, inf }
0x15c5   :  { %v891_v42 = vadd.f32 %v890_v33, %v889_v38  ;;  %v827_v33 = vsel %vm826_vm9, %v803_v22, 6.0 }
0x15c6   :  { %v828_v36 = vsel %vm808_vm6, %v827_v33, inf }
0x15c7   :  { %v892_v29 = vrot.slane %v891_v42, 2 }
0x15c9   :  { %v893_v32 = vadd.f32 %v892_v29, %v891_v42 }
0x15cb   :  { %v894_v8 = vrot.slane %v893_v32, 1 }
0x15cd   :  { %v895_v19 = vadd.f32 %v894_v8, %v893_v32 }
0x15cf   :  { %v896_v46 = vadd.f32 %v895_v19, %v1632_v55 }
0x15d1   :  { %v897_v47 = vperm.slane %v896_v46, 4 }
0x15d3   :  { %v1678_v49 = vadd.f32 %v897_v47, %v1623_v35  ;;  %v1724_v47 = vcvt.s32.f32 %v1296_v2 }
0x15d5   :  { %v899_v50 = vsel %vm808_vm6, %v1678_v49, -inf }
0x15d6   :  { %900 = vmax.xlane.f32.xlu0 %v899_v50 }
0x1649   :  { %v1682_v51 = vpop.xlane.xlu0 %900 }
0x164a   :  { %v907_v53 = vsel %vm1308_vm0, %v1682_v51, 0.0  ;;  %vm902_vm1 = vcmp.eq.f32.partialorder %v1678_v49, %v1682_v51 }
0x164b   :  { %v908_v54 = vsel %vm808_vm6, %v907_v53, 0.0  ;;  %v903_v19 = vsel %vm902_vm1, %v803_v22, 6.0  ;;  %vm1036_vm1 = vcmp.eq.s32.totalorder %v1298_v3, 1 }
0x164c   :  { %v909_v56 = vrot.slane %v908_v54, 4  ;;  %v904_v46 = vsel %vm808_vm6, %v903_v19, inf }
0x164e   :  { %v910_v57 = vadd.f32 %v909_v56, %v908_v54 }
0x1650   :  { %v911_v58 = vrot.slane %v910_v57, 2 }
0x1652   :  { %v912_v60 = vadd.f32 %v911_v58, %v910_v57 }
0x1654   :  { %v913_v61 = vrot.slane %v912_v60, 1 }
0x1656   :  { %v914_v62 = vadd.f32 %v913_v61, %v912_v60 }
0x1658   :  { %v915_v63 = vadd.f32 %v914_v62, %v1632_v55 }
0x165a   :  { %v916_v45 = vperm.slane %v915_v63, 5 }
0x165c   :  { %v917_v43 = vadd.f32 %v916_v45, %v1623_v35 }
0x165e   :  { %v918_v48 = vsel %vm808_vm6, %v917_v43, -inf }
0x165f   :  { %919 = vmax.xlane.f32.xlu1 %v918_v48 }
0x16d2   :  { %v920_v0 = vpop.xlane.xlu1 %919 }
0x16d3   :  { %v926_v1 = vsel %vm1308_vm0, %v920_v0, 0.0  ;;  %vm921_vm13 = vcmp.eq.f32.partialorder %v917_v43, %v920_v0 }
0x16d4   :  { %v927_v52 = vsel %vm808_vm6, %v926_v1, 0.0  ;;  %v922_v29 = vsel %vm921_vm13, %v803_v22, 6.0 }
0x16d5   :  { %v928_v9 = vrot.slane %v927_v52, 4  ;;  %v923_v32 = vsel %vm808_vm6, %v922_v29, inf }
0x16d7   :  { %v929_v11 = vadd.f32 %v928_v9, %v927_v52 }
0x16d9   :  { %v930_v12 = vrot.slane %v929_v11, 2 }
0x16db   :  { %v931_v4 = vadd.f32 %v930_v12, %v929_v11 }
0x16dd   :  { %v932_v13 = vrot.slane %v931_v4, 1 }
0x16df   :  { %v933_v14 = vadd.f32 %v932_v13, %v931_v4 }
0x16e1   :  { %v934_v6 = vadd.f32 %v933_v14, %v1632_v55 }
0x16e3   :  { %v935_v15 = vperm.slane %v934_v6, 6 }
0x16e5   :  { %v936_v16 = vadd.f32 %v935_v15, %v1623_v35  ;;  %v865_v35 = vsel %vm864_vm14, %v803_v22, 6.0 }
0x16e7   :  { %v937_v17 = vsel %vm808_vm6, %v936_v16, -inf }
0x16e8   :  { %938 = vmax.xlane.f32.xlu2 %v937_v17 }
0x175b   :  { %v939_v18 = vpop.xlane.xlu2 %938 }
0x175c   :  { %vm940_vm12 = vcmp.eq.f32.partialorder %v936_v16, %v939_v18  ;;  %v945_v24 = vsel %vm1308_vm0, %v939_v18, 0.0  ;;  %vm958_vm0 = vcmask 48135  }
0x175d   :  { %v946_v25 = vsel %vm808_vm6, %v945_v24, 0.0  ;;  %v941_v26 = vsel %vm940_vm12, %v803_v22, 6.0  ;;  %vm993_vm12 = vcmp.eq.s32.totalorder %v1298_v3, 5 }
0x175e   :  { %v947_v28 = vrot.slane %v946_v25, 4  ;;  %v942_v30 = vsel %vm808_vm6, %v941_v26, inf }
0x175f   :  { %943 = vmin.xlane.f32.xlu2 %v942_v30 }
0x1760   :  { %v948_v37 = vadd.f32 %v947_v28, %v946_v25 }
0x1762   :  { %v949_v39 = vrot.slane %v948_v37, 2 }
0x1764   :  { %v950_v27 = vadd.f32 %v949_v39, %v948_v37 }
0x1766   :  { %v951_v44 = vrot.slane %v950_v27, 1 }
0x1767   :  { %886 = vmin.xlane.f32.xlu2 %v885_v34 }
0x1768   :  { %v952_v7 = vadd.f32 %v951_v44, %v950_v27 }
0x176a   :  { %v953_v38 = vadd.f32 %v952_v7, %v1632_v55  ;;  %v866_v55 = vsel %vm808_vm6, %v865_v35, inf  ;;  %vm982_vm6 = vcmp.eq.s32.totalorder %v1298_v3, 6 }
0x176c   :  { %v957_v42 = vadd.f32 %v955_v41, %v953_v38 }
0x176e   :  { %v959_v31 = vsel %vm958_vm0, %v957_v42, -inf }
0x176f   :  { %960 = vmax.xlane.f32.xlu0 %v959_v31  ;;  %829 = vmin.xlane.f32.xlu2 %v828_v36 }
0x1777   :  { %924 = vmin.xlane.f32.xlu0 %v923_v32 }
0x177f   :  { %867 = vmin.xlane.f32.xlu0 %v866_v55 }
0x17d2   :  { %v944_v5 = vpop.xlane.xlu2 %943 }
0x17e2   :  { %v961_v20 = vpop.xlane.xlu0 %960 }
0x17e3   :  { %vm962_vm11 = vcmp.eq.f32.partialorder %v957_v42, %v961_v20  ;;  %968 = vst.msk [vmem:[#allocation5 - $0x7] sm:$0x80] %vm967_vm10, %v961_v20  ;;  %vm1014_vm10 = vcmp.eq.s32.totalorder %v1298_v3, 3 }
0x17e4   :  { %v963_v59 = vsel %vm962_vm11, %v803_v22, 6.0  ;;  %1062 = dma.vmem_to_hbm [thread:$0]  %s1058_s26, 16, %s1060_s24, [#allocation4]   ;;  %v887_v22 = vpop.xlane.xlu2 %886  ;;  %vm1025_vm11 = vcmp.eq.s32.totalorder %v1298_v3, 2 }
0x17e5   :  { %v964_v8 = vsel %vm958_vm0, %v963_v59, inf }
0x17e6   :  { %965 = vmin.xlane.f32.xlu1 %v964_v8 }
0x17ea   :  { %v925_v61 = vpop.xlane.xlu0 %924 }
0x17ee   :  { %905 = vmin.xlane.f32.xlu1 %v904_v46  ;;  %v830_v46 = vpop.xlane.xlu2 %829 }
0x17f2   :  { %v868_v27 = vpop.xlane.xlu0 %867 }
0x17f6   :  { %848 = vmin.xlane.f32.xlu1 %v847_v23 }
0x1859   :  { %v966_v49 = vpop.xlane.xlu1 %965 }
0x185a   :  { %v971_v50 = vperm.slane %v966_v49, 7  ;;  %v970_v60 = vsel %vm969_vm7, %v966_v49, 0.0 }
0x185c   :  { %vm972_vm4 = vcmp.eq.f32.partialorder %v1724_v47, %v971_v50 }
0x185d   :  { %v973_v10 = vsel %vm972_vm4, %v944_v5, 0.0 }
0x185e   :  { %v975_v51 = vsel %vm974_vm3, %v973_v10, 0.0 }
0x185f   :  { %v976_v53 = vrot.slane %v975_v51, 4 }
0x1861   :  { %v977_v54 = vadd.f32 %v976_v53, %v975_v51  ;;  %v906_v12 = vpop.xlane.xlu1 %905 }
0x1863   :  { %v978_v56 = vrot.slane %v977_v54, 2 }
0x1865   :  { %v979_v57 = vadd.f32 %v978_v56, %v977_v54 }
0x1867   :  { %v980_v58 = vrot.slane %v979_v57, 1 }
0x1869   :  { %v981_v2 = vadd.f32 %v980_v58, %v979_v57  ;;  %v849_v36 = vpop.xlane.xlu1 %848 }
0x186b   :  { %v983_v62 = vsel %vm982_vm6, %v981_v2, %v970_v60  ;;  %vm984_vm5 = vcmp.eq.f32.partialorder %v1724_v47, %v981_v2 }
0x186c   :  { %v985_v63 = vsel %vm984_vm5, %v925_v61, 0.0 }
0x186d   :  { %v986_v45 = vsel %vm974_vm3, %v985_v63, 0.0 }
0x186e   :  { %v987_v43 = vrot.slane %v986_v45, 4 }
0x1870   :  { %v988_v48 = vadd.f32 %v987_v43, %v986_v45 }
0x1872   :  { %v989_v0 = vrot.slane %v988_v48, 2 }
0x1874   :  { %v990_v1 = vadd.f32 %v989_v0, %v988_v48 }
0x1876   :  { %v991_v52 = vrot.slane %v990_v1, 1 }
0x1878   :  { %v992_v9 = vadd.f32 %v991_v52, %v990_v1 }
0x187a   :  { %v994_v11 = vsel %vm993_vm12, %v992_v9, %v983_v62  ;;  %vm995_vm15 = vcmp.eq.f32.partialorder %v1724_v47, %v992_v9 }
0x187b   :  { %v996_v4 = vsel %vm995_vm15, %v906_v12, 0.0 }
0x187c   :  { %v997_v13 = vsel %vm974_vm3, %v996_v4, 0.0 }
0x187d   :  { %v998_v14 = vrot.slane %v997_v13, 4 }
0x187f   :  { %v999_v6 = vadd.f32 %v998_v14, %v997_v13 }
0x1881   :  { %v1000_v15 = vrot.slane %v999_v6, 2 }
0x1883   :  { %v1001_v16 = vadd.f32 %v1000_v15, %v999_v6 }
0x1885   :  { %v1002_v17 = vrot.slane %v1001_v16, 1 }
0x1887   :  { %v1003_v18 = vadd.f32 %v1002_v17, %v1001_v16 }
0x1889   :  { %vm1005_vm9 = vcmp.eq.f32.partialorder %v1724_v47, %v1003_v18  ;;  %v1004_v51 = vsel %vm805_vm8, %v1003_v18, %v994_v11  ;;  %vm1050_vm8 = vcmask 64519  }
0x188a   :  { %v1006_v24 = vsel %vm1005_vm9, %v887_v22, 0.0 }
0x188b   :  { %v1007_v25 = vsel %vm974_vm3, %v1006_v24, 0.0 }
0x188c   :  { %v1008_v26 = vrot.slane %v1007_v25, 4 }
0x188e   :  { %v1009_v28 = vadd.f32 %v1008_v26, %v1007_v25 }
0x1890   :  { %v1010_v30 = vrot.slane %v1009_v28, 2 }
0x1892   :  { %v1011_v37 = vadd.f32 %v1010_v30, %v1009_v28 }
0x1894   :  { %v1012_v39 = vrot.slane %v1011_v37, 1 }
0x1896   :  { %v1013_v40 = vadd.f32 %v1012_v39, %v1011_v37 }
0x1898   :  { %vm1016_vm0 = vcmp.eq.f32.partialorder %v1724_v47, %v1013_v40  ;;  %v1015_v54 = vsel %vm1014_vm10, %v1013_v40, %v1004_v51 }
0x1899   :  { %v1017_v44 = vsel %vm1016_vm0, %v868_v27, 0.0 }
0x189a   :  { %v1018_v34 = vsel %vm974_vm3, %v1017_v44, 0.0 }
0x189b   :  { %v1019_v7 = vrot.slane %v1018_v34, 4 }
0x189d   :  { %v1020_v41 = vadd.f32 %v1019_v7, %v1018_v34 }
0x189f   :  { %v1021_v38 = vrot.slane %v1020_v41, 2 }
0x18a1   :  { %v1022_v33 = vadd.f32 %v1021_v38, %v1020_v41 }
0x18a3   :  { %v1023_v42 = vrot.slane %v1022_v33, 1 }
0x18a5   :  { %v1024_v31 = vadd.f32 %v1023_v42, %v1022_v33 }
0x18a7   :  { %vm1027_vm13 = vcmp.eq.f32.partialorder %v1724_v47, %v1024_v31 }
0x18a8   :  { %v1028_v29 = vsel %vm1027_vm13, %v849_v36, 0.0 }
0x18a9   :  { %v1029_v32 = vsel %vm974_vm3, %v1028_v29, 0.0 }
0x18aa   :  { %v1030_v35 = vrot.slane %v1029_v32, 4 }
0x18ac   :  { %v1031_v55 = vadd.f32 %v1030_v35, %v1029_v32 }
0x18ae   :  { %v1032_v20 = vrot.slane %v1031_v55, 2 }
0x18b0   :  { %v1033_v59 = vadd.f32 %v1032_v20, %v1031_v55 }
0x18b2   :  { %v1034_v8 = vrot.slane %v1033_v59, 1 }
0x18b4   :  { %v1035_v19 = vadd.f32 %v1034_v8, %v1033_v59 }
0x18b6   :  { %vm1038_vm14 = vcmp.eq.f32.partialorder %v1724_v47, %v1035_v19  ;;  %v1026_v47 = vsel %vm1025_vm11, %v1024_v31, %v1015_v54 }
0x18b7   :  { %v1039_v21 = vsel %vm1038_vm14, %v830_v46, 0.0  ;;  %v1037_v57 = vsel %vm1036_vm1, %v1035_v19, %v1026_v47 }
0x18b8   :  { %v1040_v23 = vsel %vm974_vm3, %v1039_v21, 0.0 }
0x18b9   :  { %v1041_v49 = vrot.slane %v1040_v23, 4 }
0x18bb   :  { %v1042_v50 = vadd.f32 %v1041_v49, %v1040_v23 }
0x18bd   :  { %v1043_v5 = vrot.slane %v1042_v50, 2 }
0x18bf   :  { %v1044_v10 = vadd.f32 %v1043_v5, %v1042_v50 }
0x18c1   :  { %v1045_v53 = vrot.slane %v1044_v10, 1 }
0x18c3   :  { %v1046_v56 = vadd.f32 %v1045_v53, %v1044_v10 }
0x18c5   :  { %v1048_v58 = vsel %vm1047_vm2, %v1046_v56, %v1037_v57 }
0x18c6   :  { %vm1099_vm3 = vcmp.lt.s32.totalorder %v1048_v58, 0  ;;  %v1100_v2 = vceil.f32 %v1048_v58  ;;  %v1101_v60 = vfloor.f32 %v1048_v58 }
0x18c8   :  { %v1102_v61 = vsel %vm1099_vm3, %v1100_v2, %v1101_v60 }
0x18c9   :  { %v1103_v62 = vcvt.f32.s32 %v1102_v61 }
0x18cb   :  { %1051 = vst.msk [vmem:[#allocation6 - $0x7] sm:$0x80] %vm1050_vm8, %v1103_v62 }
0x18cc   :  { %1073 = dma.vmem_to_hbm [thread:$0]  %s1069_s27, 16, %s1071_s30, [#allocation7]  }
0x18cd   :  { %1257 = dma.done.wait [#allocation4], 16  }
0x18ce   :  { %1258 = vsyncadd [#allocation4], 4294967280 }
0x18cf   :  { %1259 = dma.done.wait [#allocation7], 16  }
0x18d0   :  { %1260 = vsyncadd [#allocation7], 4294967280 }
0x18d1   :  { %1082 = vsyncpa [#allocation3], 1 }
0x18d2   :  { %1083 = vsyncpa [#allocation4], 1 }
0x18d3   :  { %1084 = vsyncpa [#allocation7], 1 }

</bundles_post_ra>
